<compile_context>
chip_gen: v5e
topology: v5e:2x2
jax: 0.10.0
libtpu: 0.0.40
codegen_flags: <defaults>
</compile_context>

<pallas_src>
import jax
import jax.numpy as jnp
from jax.experimental import pallas as pl
from jax.experimental.pallas import tpu as pltpu

BN_EPS = 1e-5
LEAKY_SLOPE = 0.2
LANE = 128

COMPUTE_DTYPE = jnp.bfloat16   # MXU operand dtype (accumulation is always f32)
Y_DTYPE = jnp.bfloat16         # intermediate conv-output dtype (stats stay f32)


def _round_up(x, m):
    return (x + m - 1) // m * m


def _cdiv(a, b):
    return (a + b - 1) // b


def _vmem_capacity_bytes():
    try:
        cap = getattr(pltpu.get_tpu_info(), "vmem_capacity_bytes", None)
        if cap:
            return int(cap)
    except Exception:
        pass
    return 64 << 20  # conservative fallback (v7x per-TensorCore VMEM)


def _chip_plan():
    """Returns (pass1 TILE_M cap, pass2 TILE_M cap, vmem_limit_bytes) per chip generation."""
    vmem = _vmem_capacity_bytes()
    if vmem >= (100 << 20):              # v5e / v6e: 128 MiB physical VMEM
        return 2048, 4096, 96 << 20
    return 512, 1024, 44 << 20           # v7x: 64 MiB per TensorCore


def _plan_pass1(m_true, k_true, c_pad, tile_m_cap, vmem_budget):
    """Choose (tile_m, n_m_tiles, tile_k, k_pad) subject to a double-buffered VMEM budget."""
    def footprint(tm, tk):
        return (4 * tm * tk          # 2 x bf16 patches blocks
                + 4 * tk * c_pad     # 2 x bf16 weight blocks
                + 4 * tm * c_pad     # 2 x bf16 y output blocks
                + 4 * tm * c_pad     # f32 accumulator scratch
                + 32 * c_pad)        # sum / ssq output blocks
    cap = tile_m_cap
    k_full = _round_up(k_true, 8)
    while True:
        # Split M as evenly as possible; force an even tile count for the 2-core split.
        n_tiles = _round_up(max(1, _cdiv(m_true, cap)), 2)
        tile_m = _round_up(_cdiv(m_true, n_tiles), 16)
        if footprint(tile_m, k_full) <= vmem_budget:
            return tile_m, n_tiles, k_full, k_full
        # Need to grid K: pick the largest lane-aligned tile_k that fits.
        rem = vmem_budget - 8 * tile_m * c_pad - 32 * c_pad
        tile_k = (rem // (4 * (tile_m + c_pad))) // 128 * 128 if rem > 0 else 0
        if tile_k >= 128:
            tile_k = min(tile_k, _round_up(k_true, 128))
            return tile_m, n_tiles, tile_k, _round_up(k_true, tile_k)
        if cap <= 16:
            return tile_m, n_tiles, 128, _round_up(k_true, 128)
        cap = max(16, cap // 2)


def _plan_pass2(n_tiles_total, tile_m, tile_m2_cap):
    """Pass-2 tile = largest multiple of tile_m that divides m_pad and fits the cap."""
    f = 1
    for d in range(1, n_tiles_total + 1):
        if n_tiles_total % d == 0 and d * tile_m <= tile_m2_cap:
            f = d
    return f * tile_m, n_tiles_total // f


# ---------------------------------------------------------------------------
# Pass 1: conv-as-matmul (f32 scratch accumulator over K) + per-channel stats
# ---------------------------------------------------------------------------
def conv_stats_kernel(p_ref, w_ref, y_ref, sum_ref, ssq_ref, acc_ref):
    i = pl.program_id(1)   # M tile within this core
    k = pl.program_id(2)   # K tile

    @pl.when(jnp.logical_and(i == 0, k == 0))
    def _init_stats():
        sum_ref[...] = jnp.zeros_like(sum_ref)
        ssq_ref[...] = jnp.zeros_like(ssq_ref)

    @pl.when(k == 0)
    def _init_acc():
        acc_ref[...] = jnp.zeros_like(acc_ref)

    acc_ref[...] += jnp.dot(p_ref[...], w_ref[...],
                            preferred_element_type=jnp.float32)

    @pl.when(k == pl.num_programs(2) - 1)
    def _finalize():
        y = acc_ref[...]
        y_ref[...] = y.astype(y_ref.dtype)            # bf16 intermediate
        # Cheap cross-sublane column sums (XLU/VALU have slack next to the MXU dot);
        # replaces the previous ones-row MXU matmuls.
        sum_ref[...] += jnp.sum(y, axis=0, keepdims=True)
        ssq_ref[...] += jnp.sum(y * y, axis=0, keepdims=True)


def _im2col_nhwc(x_nhwc, kh, kw, stride, padding):
    """Extract conv patches; returns (N*OH*OW, KH*KW*Cin), OH, OW."""
    x = jnp.pad(x_nhwc, ((0, 0), (padding, padding), (padding, padding), (0, 0)))
    n, hp, wp, c = x.shape
    oh = (hp - kh) // stride + 1
    ow = (wp - kw) // stride + 1
    slices = []
    for i in range(kh):
        for j in range(kw):
            slices.append(x[:, i:i + stride * oh:stride, j:j + stride * ow:stride, :])
    p = jnp.stack(slices, axis=3)                      # (N, OH, OW, KH*KW, Cin)
    return p.reshape(n * oh * ow, kh * kw * c), oh, ow


def conv_block_forward(x_nchw, weight, bias, gamma, beta, stride, padding):
    """Pallas-backed ConvBlock forward (training-mode BN).  x: (N,Cin,H,W) -> (N,Cout,OH,OW)."""
    n, cin, h, w = x_nchw.shape
    cout, cin_w, kh, kw = weight.shape
    assert cin == cin_w

    # Conv bias is omitted on purpose: batch-stat BatchNorm subtracts the per-channel mean,
    # which cancels any constant per-channel bias exactly.
    # TODO(synk): re-add the bias if this block is ever reused with eval-mode (running-stat)
    # BN or with batch_norm=False.
    del bias

    x_nhwc = jnp.transpose(x_nchw, (0, 2, 3, 1)).astype(COMPUTE_DTYPE)
    patches, oh, ow = _im2col_nhwc(x_nhwc, kh, kw, stride, padding)   # (M, K) bf16
    m_true, k_true = patches.shape

    tile_m_cap, tile_m2_cap, vmem_limit = _chip_plan()
    vmem_budget = int(vmem_limit * 0.75)

    c_pad = _round_up(cout, LANE)
    tile_m, n_tiles, tile_k, k_pad = _plan_pass1(m_true, k_true, c_pad, tile_m_cap, vmem_budget)
    m_pad = n_tiles * tile_m
    grid_m_half = n_tiles // 2
    grid_k = k_pad // tile_k

    # Zero padding: padded M rows / K cols contribute exactly 0 to the conv and the BN sums
    # (we divide by the true M below).
    patches = jnp.pad(patches, ((0, m_pad - m_true), (0, k_pad - k_true)))
    w2d = jnp.transpose(weight, (2, 3, 1, 0)).reshape(k_true, cout).astype(COMPUTE_DTYPE)
    w2d = jnp.pad(w2d, ((0, k_pad - k_true), (0, c_pad - cout)))

    flops1 = 2 * m_pad * k_pad * c_pad + 4 * m_pad * c_pad
    bytes1 = (m_pad * k_pad * 2 + n_tiles * k_pad * c_pad * 2
              + m_pad * c_pad * 2 + 16 * c_pad * 4)

    y2d, chan_sum, chan_ssq = pl.pallas_call(
        conv_stats_kernel,
        grid=(2, grid_m_half, grid_k),
        in_specs=[
            pl.BlockSpec((tile_m, tile_k), lambda c, i, k: (c * grid_m_half + i, k)),
            pl.BlockSpec((tile_k, c_pad), lambda c, i, k: (k, 0)),
        ],
        out_specs=[
            pl.BlockSpec((tile_m, c_pad), lambda c, i, k: (c * grid_m_half + i, 0)),
            # Per-core resident stat accumulators: core c owns lanes [c*c_pad, (c+1)*c_pad).
            pl.BlockSpec((1, c_pad), lambda c, i, k: (0, c)),
            pl.BlockSpec((1, c_pad), lambda c, i, k: (0, c)),
        ],
        out_shape=[
            jax.ShapeDtypeStruct((m_pad, c_pad), Y_DTYPE),
            jax.ShapeDtypeStruct((1, 2 * c_pad), jnp.float32),
            jax.ShapeDtypeStruct((1, 2 * c_pad), jnp.float32),
        ],
        scratch_shapes=[pltpu.VMEM((tile_m, c_pad), jnp.float32)],
        compiler_params=pltpu.CompilerParams(
            dimension_semantics=("parallel", "arbitrary", "arbitrary"),
            vmem_limit_bytes=vmem_limit,
        ),
        cost_estimate=pl.CostEstimate(
            flops=int(flops1), transcendentals=0, bytes_accessed=int(bytes1)),
    )(patches, w2d)

    # ------------------------------------------------------------------
    # Pass 2: folded BatchNorm + LeakyReLU; scale/shift derived in-kernel.
    # ------------------------------------------------------------------
    tile_m2, grid_m2 = _plan_pass2(n_tiles, tile_m, tile_m2_cap)
    g_pad = jnp.pad(gamma.astype(jnp.float32), (0, c_pad - cout)).reshape(1, c_pad)
    b_pad = jnp.pad(beta.astype(jnp.float32), (0, c_pad - cout)).reshape(1, c_pad)
    inv_m = 1.0 / float(m_true)

    def bn_act_kernel(y_ref, sum_ref, ssq_ref, gamma_ref, beta_ref, o_ref):
        # (1, 128)-sized math recomputed per tile: essentially free, and it removes the tiny
        # XLA ops (and their HBM round-trips / dispatch overhead) between the two passes.
        st = sum_ref[...]
        sq = ssq_ref[...]
        s = st[:, :c_pad] + st[:, c_pad:]          # combine the two per-core partials
        ss = sq[:, :c_pad] + sq[:, c_pad:]
        mean = s * inv_m
        # E[y^2] - E[y]^2 in f32; guard tiny negatives (fine for zero-mean DCGAN activations).
        var = jnp.maximum(ss * inv_m - mean * mean, 0.0)
        scale = jax.lax.rsqrt(var + BN_EPS) * gamma_ref[...]
        shift = beta_ref[...] - mean * scale
        z = y_ref[...].astype(jnp.float32) * scale + shift
        o_ref[...] = jnp.where(z > 0, z, LEAKY_SLOPE * z)

    flops2 = 8 * m_pad * c_pad
    bytes2 = m_pad * c_pad * (2 + 4) + 6 * c_pad * 4

    out2d = pl.pallas_call(
        bn_act_kernel,
        grid=(grid_m2,),
        in_specs=[
            pl.BlockSpec((tile_m2, c_pad), lambda i: (i, 0)),
            pl.BlockSpec((1, 2 * c_pad), lambda i: (0, 0)),
            pl.BlockSpec((1, 2 * c_pad), lambda i: (0, 0)),
            pl.BlockSpec((1, c_pad), lambda i: (0, 0)),
            pl.BlockSpec((1, c_pad), lambda i: (0, 0)),
        ],
        out_specs=pl.BlockSpec((tile_m2, c_pad), lambda i: (i, 0)),
        out_shape=jax.ShapeDtypeStruct((m_pad, c_pad), jnp.float32),
        compiler_params=pltpu.CompilerParams(
            dimension_semantics=("parallel",),      # independent tiles; megacore on v7x
            vmem_limit_bytes=vmem_limit,
        ),
        cost_estimate=pl.CostEstimate(
            flops=int(flops2), transcendentals=0, bytes_accessed=int(bytes2)),
    )(y2d, chan_sum, chan_ssq, g_pad, b_pad)

    out = out2d[:m_true, :cout].reshape(n, oh, ow, cout)
    return jnp.transpose(out, (0, 3, 1, 2))


def reference_forward(x_nchw, weight, bias, gamma, beta, stride, padding):
    """Pure-JAX reference (bf16 conv operands + batch-stat BN in f32 + leaky relu)."""
    y = jax.lax.conv_general_dilated(
        x_nchw.astype(COMPUTE_DTYPE), weight.astype(COMPUTE_DTYPE),
        window_strides=(stride, stride),
        padding=[(padding, padding), (padding, padding)],
        dimension_numbers=("NCHW", "OIHW", "NCHW"),
        preferred_element_type=jnp.float32,
    ) + bias.reshape(1, -1, 1, 1).astype(jnp.float32)
    mean = jnp.mean(y, axis=(0, 2, 3), keepdims=True)
    var = jnp.mean((y - mean) ** 2, axis=(0, 2, 3), keepdims=True)
    z = (y - mean) * jax.lax.rsqrt(var + BN_EPS)
    z = z * gamma.reshape(1, -1, 1, 1) + beta.reshape(1, -1, 1, 1)
    return jnp.where(z > 0, z, LEAKY_SLOPE * z)


if __name__ == "__main__":
    # DCGAN-style ConvBlock hyper-params at small synthetic shapes.
    # M = N*OH*OW = 2*24*24 = 1152 -> multiple M tiles (exercises the tiled accumulation,
    # the 2-way core split, and the fused BN epilogue).
    N, Cin, H, W = 2, 4, 48, 48
    Cout, K, STRIDE, PAD = 8, 4, 2, 1

    key = jax.random.PRNGKey(0)
    kx, kw_, kb = jax.random.split(key, 3)
    x = jax.random.normal(kx, (N, Cin, H, W), dtype=jnp.float32)
    # DCGAN-style init: N(0, 0.02) conv weights; gamma=1, beta=0 (fresh BatchNorm2d).
    weight = 0.02 * jax.random.normal(kw_, (Cout, Cin, K, K), dtype=jnp.float32)
    bias = 0.02 * jax.random.normal(kb, (Cout,), dtype=jnp.float32)
    gamma = jnp.ones((Cout,), dtype=jnp.float32)
    beta = jnp.zeros((Cout,), dtype=jnp.float32)

    fwd = jax.jit(conv_block_forward, static_argnums=(5, 6))
    out = jax.block_until_ready(fwd(x, weight, bias, gamma, beta, STRIDE, PAD))
    ref = jax.block_until_ready(
        reference_forward(x, weight, bias, gamma, beta, STRIDE, PAD))

    OH = (H + 2 * PAD - K) // STRIDE + 1
    assert out.shape == (N, Cout, OH, OH), out.shape
    max_err = float(jnp.max(jnp.abs(out - ref)))
    # bf16 intermediate conv output (perf-review item) => looser tolerance than pure f32.
    assert jnp.allclose(out, ref, atol=3e-2, rtol=3e-2), max_err

    print("KERNEL_OK")
</pallas_src>

<mosaic_0001>
module attributes {stable_mosaic.version = 11 : i64} {
  func.func @conv_stats_kernel(%arg0: i32, %arg1: i32, %arg2: i32, %arg3: memref<288x64xbf16, #tpu.memory_space<vmem>>, %arg4: memref<64x128xbf16, #tpu.memory_space<vmem>>, %arg5: memref<288x128xbf16, #tpu.memory_space<vmem>>, %arg6: memref<1x128xf32, #tpu.memory_space<vmem>>, %arg7: memref<1x128xf32, #tpu.memory_space<vmem>>, %arg8: memref<288x128xf32, #tpu.memory_space<vmem>>) attributes {dimension_semantics = [#tpu.dimension_semantics<parallel>, #tpu.dimension_semantics<arbitrary>, #tpu.dimension_semantics<arbitrary>], iteration_bounds = array<i64: 2, 2, 1>, scalar_prefetch = 0 : i64, scratch_operands = 1 : i64, tpu.core_type = #tpu.core_type<tc>, window_params = [{transform_indices = @transform_0, window_bounds = array<i64: 288, 64>}, {transform_indices = @transform_1, window_bounds = array<i64: 64, 128>}, {transform_indices = @transform_2, window_bounds = array<i64: 288, 128>}, {transform_indices = @transform_3, window_bounds = array<i64: 1, 128>}, {transform_indices = @transform_4, window_bounds = array<i64: 1, 128>}]} {
    %c0_i32 = arith.constant 0 : i32
    %0 = arith.cmpi eq, %arg1, %c0_i32 : i32
    %c0_i32_0 = arith.constant 0 : i32
    %1 = arith.cmpi eq, %arg2, %c0_i32_0 : i32
    %2 = arith.andi %0, %1 : i1
    %3 = arith.extui %2 : i1 to i32
    %c0_i32_1 = arith.constant 0 : i32
    %4 = arith.cmpi ne, %3, %c0_i32_1 : i32
    scf.if %4 {
      %cst_13 = arith.constant 0.000000e+00 : f32
      %17 = vector.broadcast %cst_13 : f32 to vector<1x128xf32>
      %c0_14 = arith.constant 0 : index
      %c0_15 = arith.constant 0 : index
      %18 = vector.load %arg6[%c0_14, %c0_15] : memref<1x128xf32, #tpu.memory_space<vmem>>, vector<1x128xf32>
      tpu.vector_store %arg6[%c0_14, %c0_15], %17 {strides = array<i32>} : memref<1x128xf32, #tpu.memory_space<vmem>>, vector<1x128xf32>,
      %cst_16 = arith.constant 0.000000e+00 : f32
      %19 = vector.broadcast %cst_16 : f32 to vector<1x128xf32>
      %c0_17 = arith.constant 0 : index
      %c0_18 = arith.constant 0 : index
      %20 = vector.load %arg7[%c0_17, %c0_18] : memref<1x128xf32, #tpu.memory_space<vmem>>, vector<1x128xf32>
      tpu.vector_store %arg7[%c0_17, %c0_18], %19 {strides = array<i32>} : memref<1x128xf32, #tpu.memory_space<vmem>>, vector<1x128xf32>,
    } else {
    }
    %c0_i32_2 = arith.constant 0 : i32
    %5 = arith.cmpi eq, %arg2, %c0_i32_2 : i32
    %6 = arith.extui %5 : i1 to i32
    %c0_i32_3 = arith.constant 0 : i32
    %7 = arith.cmpi ne, %6, %c0_i32_3 : i32
    scf.if %7 {
      %cst_13 = arith.constant 0.000000e+00 : f32
      %17 = vector.broadcast %cst_13 : f32 to vector<288x128xf32>
      %c0_14 = arith.constant 0 : index
      %c0_15 = arith.constant 0 : index
      %18 = vector.load %arg8[%c0_14, %c0_15] : memref<288x128xf32, #tpu.memory_space<vmem>>, vector<288x128xf32>
      tpu.vector_store %arg8[%c0_14, %c0_15], %17 {strides = array<i32>} : memref<288x128xf32, #tpu.memory_space<vmem>>, vector<288x128xf32>,
    } else {
    }
    %c0 = arith.constant 0 : index
    %c0_4 = arith.constant 0 : index
    %8 = vector.load %arg8[%c0, %c0_4] : memref<288x128xf32, #tpu.memory_space<vmem>>, vector<288x128xf32>
    %c0_5 = arith.constant 0 : index
    %c0_6 = arith.constant 0 : index
    %9 = vector.load %arg3[%c0_5, %c0_6] : memref<288x64xbf16, #tpu.memory_space<vmem>>, vector<288x64xbf16>
    %c0_7 = arith.constant 0 : index
    %c0_8 = arith.constant 0 : index
    %10 = vector.load %arg4[%c0_7, %c0_8] : memref<64x128xbf16, #tpu.memory_space<vmem>>, vector<64x128xbf16>
    %cst = arith.constant dense<0.000000e+00> : vector<288x128xf32>
    %11 = tpu.matmul %9, %10, %cst {dimension_numbers = #tpu.dot_dimension_numbers<[1], [0], [0], [1], [0, 0, 1, 1], [], []>} : vector<288x64xbf16>, vector<64x128xbf16>, vector<288x128xf32> -> vector<288x128xf32>
    %12 = arith.addf %8, %11 : vector<288x128xf32>
    %c0_9 = arith.constant 0 : index
    %c0_10 = arith.constant 0 : index
    %13 = vector.load %arg8[%c0_9, %c0_10] : memref<288x128xf32, #tpu.memory_space<vmem>>, vector<288x128xf32>
    tpu.vector_store %arg8[%c0_9, %c0_10], %12 {strides = array<i32>} : memref<288x128xf32, #tpu.memory_space<vmem>>, vector<288x128xf32>,
    %c0_i32_11 = arith.constant 0 : i32
    %14 = arith.cmpi eq, %arg2, %c0_i32_11 : i32
    %15 = arith.extui %14 : i1 to i32
    %c0_i32_12 = arith.constant 0 : i32
    %16 = arith.cmpi ne, %15, %c0_i32_12 : i32
    scf.if %16 {
      %c0_13 = arith.constant 0 : index
      %c0_14 = arith.constant 0 : index
      %17 = vector.load %arg8[%c0_13, %c0_14] : memref<288x128xf32, #tpu.memory_space<vmem>>, vector<288x128xf32>
      %18 = arith.truncf %17 : vector<288x128xf32> to vector<288x128xbf16>
      %c0_15 = arith.constant 0 : index
      %c0_16 = arith.constant 0 : index
      %19 = vector.load %arg5[%c0_15, %c0_16] : memref<288x128xbf16, #tpu.memory_space<vmem>>, vector<288x128xbf16>
      tpu.vector_store %arg5[%c0_15, %c0_16], %18 {strides = array<i32>} : memref<288x128xbf16, #tpu.memory_space<vmem>>, vector<288x128xbf16>,
      %c0_17 = arith.constant 0 : index
      %c0_18 = arith.constant 0 : index
      %20 = vector.load %arg6[%c0_17, %c0_18] : memref<1x128xf32, #tpu.memory_space<vmem>>, vector<1x128xf32>
      %cst_19 = arith.constant dense<0.000000e+00> : vector<128xf32>
      %21 = vector.multi_reduction <add>, %17, %cst_19 [0] : vector<288x128xf32> to vector<128xf32>
      %22 = vector.shape_cast %21 : vector<128xf32> to vector<1x128xf32>
      %23 = arith.addf %20, %22 : vector<1x128xf32>
      %c0_20 = arith.constant 0 : index
      %c0_21 = arith.constant 0 : index
      %24 = vector.load %arg6[%c0_20, %c0_21] : memref<1x128xf32, #tpu.memory_space<vmem>>, vector<1x128xf32>
      tpu.vector_store %arg6[%c0_20, %c0_21], %23 {strides = array<i32>} : memref<1x128xf32, #tpu.memory_space<vmem>>, vector<1x128xf32>,
      %c0_22 = arith.constant 0 : index
      %c0_23 = arith.constant 0 : index
      %25 = vector.load %arg7[%c0_22, %c0_23] : memref<1x128xf32, #tpu.memory_space<vmem>>, vector<1x128xf32>
      %26 = arith.mulf %17, %17 : vector<288x128xf32>
      %cst_24 = arith.constant dense<0.000000e+00> : vector<128xf32>
      %27 = vector.multi_reduction <add>, %26, %cst_24 [0] : vector<288x128xf32> to vector<128xf32>
      %28 = vector.shape_cast %27 : vector<128xf32> to vector<1x128xf32>
      %29 = arith.addf %25, %28 : vector<1x128xf32>
      %c0_25 = arith.constant 0 : index
      %c0_26 = arith.constant 0 : index
      %30 = vector.load %arg7[%c0_25, %c0_26] : memref<1x128xf32, #tpu.memory_space<vmem>>, vector<1x128xf32>
      tpu.vector_store %arg7[%c0_25, %c0_26], %29 {strides = array<i32>} : memref<1x128xf32, #tpu.memory_space<vmem>>, vector<1x128xf32>,
    } else {
    }
    return
  }
  func.func @transform_0(%arg0: i32, %arg1: i32, %arg2: i32) -> (i32, i32) {
    %c2_i32 = arith.constant 2 : i32
    %0 = arith.muli %arg0, %c2_i32 : i32
    %1 = arith.addi %0, %arg1 : i32
    %c0_i32 = arith.constant 0 : i32
    return %1, %arg2 : i32, i32
  }
  func.func @transform_1(%arg0: i32, %arg1: i32, %arg2: i32) -> (i32, i32) {
    %c0_i32 = arith.constant 0 : i32
    %c0_i32_0 = arith.constant 0 : i32
    return %arg2, %c0_i32 : i32, i32
  }
  func.func @transform_2(%arg0: i32, %arg1: i32, %arg2: i32) -> (i32, i32) {
    %c2_i32 = arith.constant 2 : i32
    %0 = arith.muli %arg0, %c2_i32 : i32
    %1 = arith.addi %0, %arg1 : i32
    %c0_i32 = arith.constant 0 : i32
    %c0_i32_0 = arith.constant 0 : i32
    return %1, %c0_i32 : i32, i32
  }
  func.func @transform_3(%arg0: i32, %arg1: i32, %arg2: i32) -> (i32, i32) {
    %c0_i32 = arith.constant 0 : i32
    %c0_i32_0 = arith.constant 0 : i32
    return %c0_i32, %arg0 : i32, i32
  }
  func.func @transform_4(%arg0: i32, %arg1: i32, %arg2: i32) -> (i32, i32) {
    %c0_i32 = arith.constant 0 : i32
    %c0_i32_0 = arith.constant 0 : i32
    return %c0_i32, %arg0 : i32, i32
  }
}

module attributes {stable_mosaic.version = 11 : i64} {
  func.func @bn_act_kernel(%arg0: i32, %arg1: memref<576x128xbf16, #tpu.memory_space<vmem>>, %arg2: memref<1x256xf32, #tpu.memory_space<vmem>>, %arg3: memref<1x256xf32, #tpu.memory_space<vmem>>, %arg4: memref<1x128xf32, #tpu.memory_space<vmem>>, %arg5: memref<1x128xf32, #tpu.memory_space<vmem>>, %arg6: memref<576x128xf32, #tpu.memory_space<vmem>>) attributes {dimension_semantics = [#tpu.dimension_semantics<parallel>], iteration_bounds = array<i64: 2>, scalar_prefetch = 0 : i64, scratch_operands = 0 : i64, tpu.core_type = #tpu.core_type<tc>, window_params = [{transform_indices = @transform_0, window_bounds = array<i64: 576, 128>}, {pipeline_mode = #tpu.pipeline_mode<synchronous>, transform_indices = @transform_1, window_bounds = array<i64: 1, 256>}, {pipeline_mode = #tpu.pipeline_mode<synchronous>, transform_indices = @transform_2, window_bounds = array<i64: 1, 256>}, {pipeline_mode = #tpu.pipeline_mode<synchronous>, transform_indices = @transform_3, window_bounds = array<i64: 1, 128>}, {pipeline_mode = #tpu.pipeline_mode<synchronous>, transform_indices = @transform_4, window_bounds = array<i64: 1, 128>}, {transform_indices = @transform_5, window_bounds = array<i64: 576, 128>}]} {
    %c0 = arith.constant 0 : index
    %c0_0 = arith.constant 0 : index
    %0 = vector.load %arg2[%c0, %c0_0] : memref<1x256xf32, #tpu.memory_space<vmem>>, vector<1x256xf32>
    %c0_1 = arith.constant 0 : index
    %c0_2 = arith.constant 0 : index
    %1 = vector.load %arg3[%c0_1, %c0_2] : memref<1x256xf32, #tpu.memory_space<vmem>>, vector<1x256xf32>
    %2 = vector.extract_strided_slice %0 {offsets = [0, 0], sizes = [1, 128], strides = [1, 1]} : vector<1x256xf32> to vector<1x128xf32>
    %3 = vector.extract_strided_slice %0 {offsets = [0, 128], sizes = [1, 128], strides = [1, 1]} : vector<1x256xf32> to vector<1x128xf32>
    %4 = arith.addf %2, %3 : vector<1x128xf32>
    %5 = vector.extract_strided_slice %1 {offsets = [0, 0], sizes = [1, 128], strides = [1, 1]} : vector<1x256xf32> to vector<1x128xf32>
    %6 = vector.extract_strided_slice %1 {offsets = [0, 128], sizes = [1, 128], strides = [1, 1]} : vector<1x256xf32> to vector<1x128xf32>
    %7 = arith.addf %5, %6 : vector<1x128xf32>
    %cst = arith.constant 8.68055562E-4 : f32
    %8 = vector.broadcast %cst : f32 to vector<1x128xf32>
    %9 = arith.mulf %4, %8 : vector<1x128xf32>
    %cst_3 = arith.constant 8.68055562E-4 : f32
    %10 = vector.broadcast %cst_3 : f32 to vector<1x128xf32>
    %11 = arith.mulf %7, %10 : vector<1x128xf32>
    %12 = arith.mulf %9, %9 : vector<1x128xf32>
    %13 = arith.subf %11, %12 : vector<1x128xf32>
    %cst_4 = arith.constant 0.000000e+00 : f32
    %14 = vector.broadcast %cst_4 : f32 to vector<1x128xf32>
    %15 = arith.maximumf %13, %14 : vector<1x128xf32>
    %cst_5 = arith.constant 9.99999974E-6 : f32
    %16 = vector.broadcast %cst_5 : f32 to vector<1x128xf32>
    %17 = arith.addf %15, %16 : vector<1x128xf32>
    %18 = math.rsqrt %17 : vector<1x128xf32>
    %c0_6 = arith.constant 0 : index
    %c0_7 = arith.constant 0 : index
    %19 = vector.load %arg4[%c0_6, %c0_7] : memref<1x128xf32, #tpu.memory_space<vmem>>, vector<1x128xf32>
    %20 = arith.mulf %18, %19 : vector<1x128xf32>
    %c0_8 = arith.constant 0 : index
    %c0_9 = arith.constant 0 : index
    %21 = vector.load %arg5[%c0_8, %c0_9] : memref<1x128xf32, #tpu.memory_space<vmem>>, vector<1x128xf32>
    %22 = arith.mulf %9, %20 : vector<1x128xf32>
    %23 = arith.subf %21, %22 : vector<1x128xf32>
    %c0_10 = arith.constant 0 : index
    %c0_11 = arith.constant 0 : index
    %24 = vector.load %arg1[%c0_10, %c0_11] : memref<576x128xbf16, #tpu.memory_space<vmem>>, vector<576x128xbf16>
    %25 = arith.extf %24 : vector<576x128xbf16> to vector<576x128xf32>
    %26 = vector.broadcast %20 : vector<1x128xf32> to vector<576x128xf32>
    %27 = arith.mulf %25, %26 : vector<576x128xf32>
    %28 = vector.broadcast %23 : vector<1x128xf32> to vector<576x128xf32>
    %29 = arith.addf %27, %28 : vector<576x128xf32>
    %cst_12 = arith.constant 0.000000e+00 : f32
    %30 = vector.broadcast %cst_12 : f32 to vector<576x128xf32>
    %31 = arith.cmpf ogt, %29, %30 : vector<576x128xf32>
    %cst_13 = arith.constant 2.000000e-01 : f32
    %32 = vector.broadcast %cst_13 : f32 to vector<576x128xf32>
    %33 = arith.mulf %32, %29 : vector<576x128xf32>
    %34 = arith.select %31, %29, %33 : vector<576x128xi1>, vector<576x128xf32>
    %c0_14 = arith.constant 0 : index
    %c0_15 = arith.constant 0 : index
    %35 = vector.load %arg6[%c0_14, %c0_15] : memref<576x128xf32, #tpu.memory_space<vmem>>, vector<576x128xf32>
    tpu.vector_store %arg6[%c0_14, %c0_15], %34 {strides = array<i32>} : memref<576x128xf32, #tpu.memory_space<vmem>>, vector<576x128xf32>,
    return
  }
  func.func @transform_0(%arg0: i32) -> (i32, i32) {
    %c0_i32 = arith.constant 0 : i32
    %c0_i32_0 = arith.constant 0 : i32
    return %arg0, %c0_i32 : i32, i32
  }
  func.func @transform_1(%arg0: i32) -> (i32, i32) {
    %c0_i32 = arith.constant 0 : i32
    %c0_i32_0 = arith.constant 0 : i32
    %c0_i32_1 = arith.constant 0 : i32
    return %c0_i32, %c0_i32_0 : i32, i32
  }
  func.func @transform_2(%arg0: i32) -> (i32, i32) {
    %c0_i32 = arith.constant 0 : i32
    %c0_i32_0 = arith.constant 0 : i32
    %c0_i32_1 = arith.constant 0 : i32
    return %c0_i32, %c0_i32_0 : i32, i32
  }
  func.func @transform_3(%arg0: i32) -> (i32, i32) {
    %c0_i32 = arith.constant 0 : i32
    %c0_i32_0 = arith.constant 0 : i32
    %c0_i32_1 = arith.constant 0 : i32
    return %c0_i32, %c0_i32_0 : i32, i32
  }
  func.func @transform_4(%arg0: i32) -> (i32, i32) {
    %c0_i32 = arith.constant 0 : i32
    %c0_i32_0 = arith.constant 0 : i32
    %c0_i32_1 = arith.constant 0 : i32
    return %c0_i32, %c0_i32_0 : i32, i32
  }
  func.func @transform_5(%arg0: i32) -> (i32, i32) {
    %c0_i32 = arith.constant 0 : i32
    %c0_i32_0 = arith.constant 0 : i32
    return %arg0, %c0_i32 : i32, i32
  }
}

</mosaic_0001>

<bundles_post_ra>
// kernel: conv_block_forward.3
= control target key start
LH: loop header
LB: loop body
LE: loop exit
PB: predicated region body
PF: predicated region fallthrough
CT: control target
= control target key end

     0   :  { %s1133_s18 = smov 0   ;;  %s1501_s0 = inlined_call_operand.vmem [shape: bf16[1152,128], index: 0, kind: input, shape index: {}]   ;;  %s1502_s1 = inlined_call_operand.vmem [shape: f32[1,256], index: 1, kind: input, shape index: {}]   ;;  %s1503_s2 = inlined_call_operand.vmem [shape: f32[1,256], index: 2, kind: input, shape index: {}]   ;;  %s1504_s3 = inlined_call_operand.vmem [shape: f32[1,128], index: 3, kind: input, shape index: {}]   ;;  %s1505_s4 = inlined_call_operand.vmem [shape: f32[1,128], index: 4, kind: input, shape index: {}]   ;;  %s1506_s5 = inlined_call_operand.vmem [shape: f32[1152,128], index: 5, kind: output, shape index: {}]  }
   0x1 LB: > { %s897_s19 = sadd.s32 4294967295, %s1101_s18   ;;  %p901_p0 = scmp.ge.s32.totalorder %s1101_s18, 1  ;;  %s1101_s18 = sphi %s1133_s18, %s15_s18  }
   0x2   : > { %p188_p1 = scmp.lt.s32.totalorder %s1101_s18, 3 }
   0x4   : > { %p189_p2 = pnand %p901_p0, %p188_p1 }
   0x5   : > { %s216_s24 = smul.u32 (!%p189_p2), 72, %s897_s19 }
   0x6   : > { %192 = sbr.rel (%p189_p2) target bundleno = 154 (0x9a), region = 40 }
   0x7   : > { %p217_p3 = scmp.lt.s32.totalorder (!%p189_p2), %s216_s24, 143 }
   0xb   : > { %v228_v0 = vld [vmem:[%s1502_s1] sm:$0x3]  ;;  %s1510_s24 = smov (!%p217_p3, %s216_s24), 143 }
   0xc   : > { %v229_v1 = vld [vmem:[%s1503_s2] sm:$0x3]  ;;  %v231_v2 = vrot.slane %v228_v0, 1  ;;  %s902_s25 = sshll.u32 %s1510_s24, 2  ;;  %s903_s8 = sshll.u32 %s1510_s24, 3 }
   0xd   : > { %v235_v3 = vrot.slane %v229_v1, 1  ;;  %s1157_s28 = scalar_lea.vmem %s1501_s0, %s902_s25  ;;  %v254_v35 = vld [vmem:[%s1504_s3] sm:$0x1]  ;;  %s1249_s11 = scalar_lea.vmem %s1506_s5, %s903_s8 }
   0xe   : > { %v233_v4 = vadd.f32 %v231_v2, %v228_v0  ;;  %v907_v15 = vld [vmem:[%s1157_s28] sm:$0xff]   ;;  %v1050_v16 = vld [vmem:[%s1157_s28 + $0x8] sm:$0xff]   ;;  %v1051_v18 = vld [vmem:[%s1157_s28 + $0x10] sm:$0xff]  }
   0xf   : > { %v237_v5 = vadd.f32 %v235_v3, %v229_v1  ;;  %v1052_v19 = vld [vmem:[%s1157_s28 + $0x18] sm:$0xff]   ;;  %v1053_v20 = vld [vmem:[%s1157_s28 + $0x20] sm:$0xff]   ;;  %v908_v22 = vunpack.c.l.bf16 %v907_v15  ;;  %v909_v23 = vunpack.c.h.bf16 %v907_v15  ;;  %v912_v24 = vunpack.c.l.bf16 %v1050_v16  ;;  %v1054_v25 = vld [vmem:[%s1157_s28 + $0x28] sm:$0xff]  }
  0x10   : > { %v1147_v6 = vmul.f32 0.00086805556, %v233_v4  ;;  %v1055_v26 = vld [vmem:[%s1157_s28 + $0x30] sm:$0xff]   ;;  %v913_v28 = vunpack.c.h.bf16 %v1050_v16  ;;  %v916_v29 = vunpack.c.l.bf16 %v1051_v18  ;;  %v917_v30 = vunpack.c.h.bf16 %v1051_v18  ;;  %v1171_v32 = vld [vmem:[%s1157_s28 + $0x38] sm:$0xff]   ;;  %v1174_v33 = vld [vmem:[%s1157_s28 + $0x40] sm:$0xff]  }
  0x11   : > { %v239_v7 = vmul.f32 0.00086805556, %v237_v5  ;;  %v920_v31 = vunpack.c.l.bf16 %v1052_v19  ;;  %v921_v36 = vunpack.c.h.bf16 %v1052_v19  ;;  %v924_v37 = vunpack.c.l.bf16 %v1053_v20  ;;  %v1180_v39 = vld [vmem:[%s1157_s28 + $0x48] sm:$0xff]   ;;  %v1183_v44 = vld [vmem:[%s1157_s28 + $0x50] sm:$0xff]   ;;  %v1186_v45 = vld [vmem:[%s1157_s28 + $0x58] sm:$0xff]  }
  0x12   : > { %v240_v8 = vmul.f32 %v1147_v6, %v1147_v6  ;;  %v925_v38 = vunpack.c.h.bf16 %v1053_v20  ;;  %v928_v40 = vunpack.c.l.bf16 %v1054_v25  ;;  %v929_v41 = vunpack.c.h.bf16 %v1054_v25  ;;  %v1194_v50 = vld [vmem:[%s1157_s28 + $0x60] sm:$0xff]   ;;  %v1200_v55 = vld [vmem:[%s1157_s28 + $0x68] sm:$0xff]   ;;  %v1210_v61 = vld [vmem:[%s1157_s28 + $0x70] sm:$0xff]  }
  0x13   : > { %v932_v42 = vunpack.c.l.bf16 %v1055_v26  ;;  %v933_v43 = vunpack.c.h.bf16 %v1055_v26  ;;  %v936_v47 = vunpack.c.l.bf16 %v1171_v32  ;;  %v937_v48 = vunpack.c.h.bf16 %v1171_v32  ;;  %v256_v56 = vld [vmem:[%s1505_s4] sm:$0x1] }
  0x14   : > { %v241_v9 = vsub.f32 %v239_v7, %v240_v8  ;;  %v940_v49 = vunpack.c.l.bf16 %v1174_v33  ;;  %v941_v52 = vunpack.c.h.bf16 %v1174_v33  ;;  %v944_v53 = vunpack.c.l.bf16 %v1180_v39 }
  0x15   : > { %v945_v54 = vunpack.c.h.bf16 %v1180_v39  ;;  %v948_v57 = vunpack.c.l.bf16 %v1183_v44  ;;  %v949_v58 = vunpack.c.h.bf16 %v1183_v44  ;;  %v952_v59 = vunpack.c.l.bf16 %v1186_v45 }
  0x16   : > { %v242_v10 = vmax.f32 %v241_v9, 0.0  ;;  %v953_v60 = vunpack.c.h.bf16 %v1186_v45  ;;  %v956_v0 = vunpack.c.l.bf16 %v1194_v50  ;;  %v957_v1 = vunpack.c.h.bf16 %v1194_v50 }
  0x17   : > { %v960_v2 = vunpack.c.l.bf16 %v1200_v55  ;;  %v961_v3 = vunpack.c.h.bf16 %v1200_v55  ;;  %v964_v4 = vunpack.c.l.bf16 %v1210_v61  ;;  %v965_v5 = vunpack.c.h.bf16 %v1210_v61 }
  0x18   : > { %v243_v11 = vadd.f32 1e-05, %v242_v10 }
  0x1a   : > { %1093 = vrsqrt.f32 %v243_v11  ;;  %vm250_vm0 = vweird.f32 %v243_v11 }
  0x20   : > { %v1094_v12 = vpop.eup %1093 }
  0x21   : > { %v245_v13 = vmul.f32 %v1094_v12, %v243_v11  ;;  %vm251_vm1 = vweird.f32 %v1094_v12 }
  0x22   : > { %vm1166_vm2 = vmor %vm250_vm0, %vm251_vm1 }
  0x23   : > { %v246_v14 = vmul.f32 %v1094_v12, %v245_v13 }
  0x25   : > { %v247_v17 = vmul.f32 0.5, %v246_v14 }
  0x27   : > { %v248_v21 = vsub.f32 1.5, %v247_v17 }
  0x29   : > { %v249_v34 = vmul.f32 %v1094_v12, %v248_v21 }
  0x2b   : > { %v253_v46 = vsel %vm1166_vm2, %v1094_v12, %v249_v34 }
  0x2c   : > { %v255_v51 = vmul.f32 %v254_v35, %v253_v46 }
  0x2e   : > { %v257_v62 = vmul.f32 %v255_v51, %v1147_v6  ;;  %v1213_v63 = vperm.slane %v255_v51, 0 }
  0x30   : > { %v258_v7 = vsub.f32 %v256_v56, %v257_v62  ;;  %v406_v8 = vmul.f32 %v908_v22, %v1213_v63  ;;  %v407_v6 = vmul.f32 %v909_v23, %v1213_v63  ;;  %v408_v9 = vmul.f32 %v912_v24, %v1213_v63 }
  0x31   : > { %v409_v10 = vmul.f32 %v913_v28, %v1213_v63  ;;  %v410_v11 = vmul.f32 %v916_v29, %v1213_v63  ;;  %v411_v12 = vmul.f32 %v917_v30, %v1213_v63  ;;  %v412_v13 = vmul.f32 %v920_v31, %v1213_v63 }
  0x32   : > { %v1228_v14 = vperm.slane %v258_v7, 0  ;;  %v413_v15 = vmul.f32 %v921_v36, %v1213_v63  ;;  %v414_v16 = vmul.f32 %v924_v37, %v1213_v63  ;;  %v415_v17 = vmul.f32 %v925_v38, %v1213_v63 }
  0x33   : > { %v416_v18 = vmul.f32 %v928_v40, %v1213_v63  ;;  %v417_v19 = vmul.f32 %v929_v41, %v1213_v63  ;;  %v418_v20 = vmul.f32 %v932_v42, %v1213_v63  ;;  %v419_v21 = vmul.f32 %v933_v43, %v1213_v63 }
  0x34   : > { %v481_v22 = vadd.f32 %v1228_v14, %v406_v8  ;;  %v482_v23 = vadd.f32 %v1228_v14, %v407_v6  ;;  %v483_v24 = vadd.f32 %v1228_v14, %v408_v9  ;;  %v484_v25 = vadd.f32 %v1228_v14, %v409_v10 }
  0x35   : > { %v485_v26 = vadd.f32 %v1228_v14, %v410_v11  ;;  %v486_v27 = vadd.f32 %v1228_v14, %v411_v12  ;;  %v487_v28 = vadd.f32 %v1228_v14, %v412_v13  ;;  %v488_v29 = vadd.f32 %v1228_v14, %v413_v15 }
  0x36   : > { %vm553_vm3 = vcmp.gt.f32.partialorder %v481_v22, 0.0  ;;  %v625_v30 = vmul.f32 0.2, %v481_v22  ;;  %vm554_vm4 = vcmp.gt.f32.partialorder %v482_v23, 0.0  ;;  %v626_v31 = vmul.f32 0.2, %v482_v23 }
  0x37   : > { %vm555_vm5 = vcmp.gt.f32.partialorder %v483_v24, 0.0  ;;  %v627_v34 = vmul.f32 0.2, %v483_v24  ;;  %vm556_vm6 = vcmp.gt.f32.partialorder %v484_v25, 0.0  ;;  %v628_v35 = vmul.f32 0.2, %v484_v25 }
  0x38   : > { %v697_v36 = vsel %vm553_vm3, %v481_v22, %v625_v30  ;;  %v698_v37 = vsel %vm554_vm4, %v482_v23, %v626_v31  ;;  %vm557_vm7 = vcmp.gt.f32.partialorder %v485_v26, 0.0  ;;  %v629_v38 = vmul.f32 0.2, %v485_v26 }
  0x39   : > { %769 = vst [vmem:[%s1249_s11] sm:$0xff] %v697_v36  ;;  %v699_v40 = vsel %vm555_vm5, %v483_v24, %v627_v34  ;;  %v700_v41 = vsel %vm556_vm6, %v484_v25, %v628_v35  ;;  %vm558_vm8 = vcmp.gt.f32.partialorder %v486_v27, 0.0  ;;  %v630_v42 = vmul.f32 0.2, %v486_v27 }
  0x3a   : > { %770 = vst [vmem:[%s1249_s11 + $0x8] sm:$0xff] %v698_v37  ;;  %v701_v43 = vsel %vm557_vm7, %v485_v26, %v629_v38  ;;  %vm559_vm9 = vcmp.gt.f32.partialorder %v487_v28, 0.0  ;;  %v631_v46 = vmul.f32 0.2, %v487_v28  ;;  %vm560_vm10 = vcmp.gt.f32.partialorder %v488_v29, 0.0 }
  0x3b   : > { %771 = vst [vmem:[%s1249_s11 + $0x10] sm:$0xff] %v699_v40  ;;  %v702_v51 = vsel %vm558_vm8, %v486_v27, %v630_v42  ;;  %v632_v56 = vmul.f32 0.2, %v488_v29  ;;  %v489_v62 = vadd.f32 %v1228_v14, %v414_v16  ;;  %v490_v7 = vadd.f32 %v1228_v14, %v415_v17 }
  0x3c   : > { %772 = vst [vmem:[%s1249_s11 + $0x18] sm:$0xff] %v700_v41  ;;  %v703_v8 = vsel %vm559_vm9, %v487_v28, %v631_v46  ;;  %v491_v6 = vadd.f32 %v1228_v14, %v416_v18  ;;  %v492_v9 = vadd.f32 %v1228_v14, %v417_v19  ;;  %v493_v10 = vadd.f32 %v1228_v14, %v418_v20 }
  0x3d   : > { %773 = vst [vmem:[%s1249_s11 + $0x20] sm:$0xff] %v701_v43  ;;  %v704_v11 = vsel %vm560_vm10, %v488_v29, %v632_v56  ;;  %vm561_vm11 = vcmp.gt.f32.partialorder %v489_v62, 0.0  ;;  %v633_v12 = vmul.f32 0.2, %v489_v62  ;;  %vm562_vm12 = vcmp.gt.f32.partialorder %v490_v7, 0.0 }
  0x3e   : > { %774 = vst [vmem:[%s1249_s11 + $0x28] sm:$0xff] %v702_v51  ;;  %v634_v13 = vmul.f32 0.2, %v490_v7  ;;  %vm563_vm13 = vcmp.gt.f32.partialorder %v491_v6, 0.0  ;;  %v635_v15 = vmul.f32 0.2, %v491_v6  ;;  %v494_v16 = vadd.f32 %v1228_v14, %v419_v21 }
  0x3f   : > { %775 = vst [vmem:[%s1249_s11 + $0x30] sm:$0xff] %v703_v8  ;;  %v705_v17 = vsel %vm561_vm11, %v489_v62, %v633_v12  ;;  %vm564_vm14 = vcmp.gt.f32.partialorder %v492_v9, 0.0  ;;  %v636_v18 = vmul.f32 0.2, %v492_v9  ;;  %vm565_vm15 = vcmp.gt.f32.partialorder %v493_v10, 0.0 }
  0x40   : > { %776 = vst [vmem:[%s1249_s11 + $0x38] sm:$0xff] %v704_v11  ;;  %v706_v19 = vsel %vm562_vm12, %v490_v7, %v634_v13  ;;  %v707_v20 = vsel %vm563_vm13, %v491_v6, %v635_v15  ;;  %v637_v22 = vmul.f32 0.2, %v493_v10  ;;  %vm566_vm0 = vcmp.gt.f32.partialorder %v494_v16, 0.0 }
  0x41   : > { %777 = vst [vmem:[%s1249_s11 + $0x40] sm:$0xff] %v705_v17  ;;  %v708_v23 = vsel %vm564_vm14, %v492_v9, %v636_v18  ;;  %v638_v24 = vmul.f32 0.2, %v494_v16  ;;  %v420_v21 = vmul.f32 %v936_v47, %v1213_v63  ;;  %v421_v25 = vmul.f32 %v937_v48, %v1213_v63  ;;  %v1064_v18 = vld [vmem:[%s1157_s28 + $0x78] sm:$0xff]  }
  0x42   : > { %778 = vst [vmem:[%s1249_s11 + $0x48] sm:$0xff] %v706_v19  ;;  %v709_v26 = vsel %vm565_vm15, %v493_v10, %v637_v22  ;;  %v422_v27 = vmul.f32 %v940_v49, %v1213_v63  ;;  %v423_v28 = vmul.f32 %v941_v52, %v1213_v63  ;;  %v424_v29 = vmul.f32 %v944_v53, %v1213_v63 }
  0x43   : > { %779 = vst [vmem:[%s1249_s11 + $0x50] sm:$0xff] %v707_v20  ;;  %v710_v47 = vsel %vm566_vm0, %v494_v16, %v638_v24  ;;  %v495_v32 = vadd.f32 %v1228_v14, %v420_v21  ;;  %v496_v48 = vadd.f32 %v1228_v14, %v421_v25  ;;  %v425_v30 = vmul.f32 %v945_v54, %v1213_v63  ;;  %v1066_v25 = vld [vmem:[%s1157_s28 + $0x88] sm:$0xff]  }
  0x44   : > { %780 = vst [vmem:[%s1249_s11 + $0x58] sm:$0xff] %v708_v23  ;;  %v497_v49 = vadd.f32 %v1228_v14, %v422_v27  ;;  %v498_v33 = vadd.f32 %v1228_v14, %v423_v28  ;;  %v499_v52 = vadd.f32 %v1228_v14, %v424_v29  ;;  %v426_v53 = vmul.f32 %v948_v57, %v1213_v63  ;;  %v1065_v23 = vld [vmem:[%s1157_s28 + $0x80] sm:$0xff]  }
  0x45   : > { %781 = vst [vmem:[%s1249_s11 + $0x60] sm:$0xff] %v709_v26  ;;  %vm567_vm1 = vcmp.gt.f32.partialorder %v495_v32, 0.0  ;;  %v639_v31 = vmul.f32 0.2, %v495_v32  ;;  %vm568_vm2 = vcmp.gt.f32.partialorder %v496_v48, 0.0  ;;  %v500_v39 = vadd.f32 %v1228_v14, %v425_v30 }
  0x46   : > { %782 = vst [vmem:[%s1249_s11 + $0x68] sm:$0xff] %v710_v47  ;;  %v640_v54 = vmul.f32 0.2, %v496_v48  ;;  %vm569_vm3 = vcmp.gt.f32.partialorder %v497_v49, 0.0  ;;  %v641_v34 = vmul.f32 0.2, %v497_v49  ;;  %v501_v35 = vadd.f32 %v1228_v14, %v426_v53 }
  0x47   : > { %v711_v36 = vsel %vm567_vm1, %v495_v32, %v639_v31  ;;  %vm570_vm4 = vcmp.gt.f32.partialorder %v498_v33, 0.0  ;;  %v642_v37 = vmul.f32 0.2, %v498_v33  ;;  %vm571_vm5 = vcmp.gt.f32.partialorder %v499_v52, 0.0 }
  0x48   : > { %783 = vst [vmem:[%s1249_s11 + $0x70] sm:$0xff] %v711_v36  ;;  %v712_v57 = vsel %vm568_vm2, %v496_v48, %v640_v54  ;;  %v713_v38 = vsel %vm569_vm3, %v497_v49, %v641_v34  ;;  %v643_v40 = vmul.f32 0.2, %v499_v52  ;;  %vm572_vm6 = vcmp.gt.f32.partialorder %v500_v39, 0.0 }
  0x49   : > { %784 = vst [vmem:[%s1249_s11 + $0x78] sm:$0xff] %v712_v57  ;;  %v714_v41 = vsel %vm570_vm4, %v498_v33, %v642_v37  ;;  %v644_v42 = vmul.f32 0.2, %v500_v39  ;;  %vm573_vm7 = vcmp.gt.f32.partialorder %v501_v35, 0.0  ;;  %v645_v43 = vmul.f32 0.2, %v501_v35 }
  0x4a   : > { %785 = vst [vmem:[%s1249_s11 + $0x80] sm:$0xff] %v713_v38  ;;  %v715_v46 = vsel %vm571_vm5, %v499_v52, %v643_v40  ;;  %v427_v51 = vmul.f32 %v949_v58, %v1213_v63  ;;  %v428_v56 = vmul.f32 %v952_v59, %v1213_v63  ;;  %v429_v62 = vmul.f32 %v953_v60, %v1213_v63  ;;  %v1067_v52 = vld [vmem:[%s1157_s28 + $0x90] sm:$0xff]  }
  0x4b   : > { %786 = vst [vmem:[%s1249_s11 + $0x88] sm:$0xff] %v714_v41  ;;  %v716_v7 = vsel %vm572_vm6, %v500_v39, %v644_v42  ;;  %v717_v8 = vsel %vm573_vm7, %v501_v35, %v645_v43  ;;  %v430_v6 = vmul.f32 %v956_v0, %v1213_v63  ;;  %v431_v44 = vmul.f32 %v957_v1, %v1213_v63  ;;  %v1068_v43 = vld [vmem:[%s1157_s28 + $0x98] sm:$0xff]  }
  0x4c   : > { %787 = vst [vmem:[%s1249_s11 + $0x90] sm:$0xff] %v715_v46  ;;  %v502_v58 = vadd.f32 %v1228_v14, %v427_v51  ;;  %v503_v59 = vadd.f32 %v1228_v14, %v428_v56  ;;  %v504_v45 = vadd.f32 %v1228_v14, %v429_v62  ;;  %v432_v60 = vmul.f32 %v960_v2, %v1213_v63 }
  0x4d   : > { %788 = vst [vmem:[%s1249_s11 + $0x98] sm:$0xff] %v716_v7  ;;  %v505_v9 = vadd.f32 %v1228_v14, %v430_v6  ;;  %v506_v0 = vadd.f32 %v1228_v14, %v431_v44  ;;  %v433_v50 = vmul.f32 %v961_v3, %v1213_v63  ;;  %v434_v1 = vmul.f32 %v964_v4, %v1213_v63 }
  0x4e   : > { %789 = vst [vmem:[%s1249_s11 + $0xa0] sm:$0xff] %v717_v8  ;;  %vm574_vm8 = vcmp.gt.f32.partialorder %v502_v58, 0.0  ;;  %v646_v10 = vmul.f32 0.2, %v502_v58  ;;  %vm575_vm9 = vcmp.gt.f32.partialorder %v503_v59, 0.0  ;;  %vm576_vm10 = vcmp.gt.f32.partialorder %v504_v45, 0.0 }
  0x4f   : > { %v647_v2 = vmul.f32 0.2, %v503_v59  ;;  %v648_v11 = vmul.f32 0.2, %v504_v45  ;;  %vm577_vm11 = vcmp.gt.f32.partialorder %v505_v9, 0.0  ;;  %vm578_vm12 = vcmp.gt.f32.partialorder %v506_v0, 0.0 }
  0x50   : > { %v718_v12 = vsel %vm574_vm8, %v502_v58, %v646_v10  ;;  %v649_v55 = vmul.f32 0.2, %v505_v9  ;;  %v650_v3 = vmul.f32 0.2, %v506_v0  ;;  %v507_v13 = vadd.f32 %v1228_v14, %v432_v60  ;;  %v1069_v8 = vld [vmem:[%s1157_s28 + $0xa0] sm:$0xff]  }
  0x51   : > { %790 = vst [vmem:[%s1249_s11 + $0xa8] sm:$0xff] %v718_v12  ;;  %v719_v4 = vsel %vm575_vm9, %v503_v59, %v647_v2  ;;  %v720_v15 = vsel %vm576_vm10, %v504_v45, %v648_v11  ;;  %v508_v16 = vadd.f32 %v1228_v14, %v433_v50  ;;  %v509_v17 = vadd.f32 %v1228_v14, %v434_v1  ;;  %v1070_v45 = vld [vmem:[%s1157_s28 + $0xa8] sm:$0xff]  }
  0x52   : > { %791 = vst [vmem:[%s1249_s11 + $0xb0] sm:$0xff] %v719_v4  ;;  %v721_v19 = vsel %vm577_vm11, %v505_v9, %v649_v55  ;;  %v722_v20 = vsel %vm578_vm12, %v506_v0, %v650_v3  ;;  %vm579_vm13 = vcmp.gt.f32.partialorder %v507_v13, 0.0  ;;  %v651_v22 = vmul.f32 0.2, %v507_v13 }
  0x53   : > { %792 = vst [vmem:[%s1249_s11 + $0xb8] sm:$0xff] %v720_v15  ;;  %vm580_vm14 = vcmp.gt.f32.partialorder %v508_v16, 0.0  ;;  %v652_v24 = vmul.f32 0.2, %v508_v16  ;;  %vm581_vm15 = vcmp.gt.f32.partialorder %v509_v17, 0.0  ;;  %v435_v21 = vmul.f32 %v965_v5, %v1213_v63 }
  0x54   : > { %793 = vst [vmem:[%s1249_s11 + $0xc0] sm:$0xff] %v721_v19  ;;  %v723_v26 = vsel %vm579_vm13, %v507_v13, %v651_v22  ;;  %v653_v27 = vmul.f32 0.2, %v509_v17  ;;  %v968_v28 = vunpack.c.l.bf16 %v1064_v18  ;;  %v969_v29 = vunpack.c.h.bf16 %v1064_v18 }
  0x55   : > { %794 = vst [vmem:[%s1249_s11 + $0xc8] sm:$0xff] %v722_v20  ;;  %v724_v47 = vsel %vm580_vm14, %v508_v16, %v652_v24  ;;  %v510_v32 = vadd.f32 %v1228_v14, %v435_v21  ;;  %v972_v48 = vunpack.c.l.bf16 %v1065_v23  ;;  %v973_v30 = vunpack.c.h.bf16 %v1065_v23 }
  0x56   : > { %795 = vst [vmem:[%s1249_s11 + $0xd0] sm:$0xff] %v723_v26  ;;  %v725_v49 = vsel %vm581_vm15, %v509_v17, %v653_v27  ;;  %v436_v61 = vmul.f32 %v968_v28, %v1213_v63  ;;  %v437_v5 = vmul.f32 %v969_v29, %v1213_v63  ;;  %v976_v33 = vunpack.c.l.bf16 %v1066_v25 }
  0x57   : > { %796 = vst [vmem:[%s1249_s11 + $0xd8] sm:$0xff] %v724_v47  ;;  %vm582_vm0 = vcmp.gt.f32.partialorder %v510_v32, 0.0  ;;  %v654_v53 = vmul.f32 0.2, %v510_v32  ;;  %v438_v31 = vmul.f32 %v972_v48, %v1213_v63  ;;  %v439_v39 = vmul.f32 %v973_v30, %v1213_v63  ;;  %v1071_v30 = vld [vmem:[%s1157_s28 + $0xb0] sm:$0xff]  }
  0x58   : > { %797 = vst [vmem:[%s1249_s11 + $0xe0] sm:$0xff] %v725_v49  ;;  %v511_v54 = vadd.f32 %v1228_v14, %v436_v61  ;;  %v512_v34 = vadd.f32 %v1228_v14, %v437_v5  ;;  %v440_v35 = vmul.f32 %v976_v33, %v1213_v63  ;;  %v977_v36 = vunpack.c.h.bf16 %v1066_v25  ;;  %v1072_v33 = vld [vmem:[%s1157_s28 + $0xb8] sm:$0xff]  }
  0x59   : > { %v726_v37 = vsel %vm582_vm0, %v510_v32, %v654_v53  ;;  %v513_v57 = vadd.f32 %v1228_v14, %v438_v31  ;;  %v514_v38 = vadd.f32 %v1228_v14, %v439_v39  ;;  %v980_v40 = vunpack.c.l.bf16 %v1067_v52  ;;  %v1073_v31 = vld [vmem:[%s1157_s28 + $0xc0] sm:$0xff]  }
  0x5a   : > { %798 = vst [vmem:[%s1249_s11 + $0xe8] sm:$0xff] %v726_v37  ;;  %vm583_vm1 = vcmp.gt.f32.partialorder %v511_v54, 0.0  ;;  %v655_v41 = vmul.f32 0.2, %v511_v54  ;;  %vm584_vm2 = vcmp.gt.f32.partialorder %v512_v34, 0.0  ;;  %v515_v42 = vadd.f32 %v1228_v14, %v440_v35 }
  0x5b   : > { %v656_v46 = vmul.f32 0.2, %v512_v34  ;;  %vm585_vm3 = vcmp.gt.f32.partialorder %v513_v57, 0.0  ;;  %v657_v51 = vmul.f32 0.2, %v513_v57  ;;  %vm586_vm4 = vcmp.gt.f32.partialorder %v514_v38, 0.0 }
  0x5c   : > { %v727_v56 = vsel %vm583_vm1, %v511_v54, %v655_v41  ;;  %v658_v62 = vmul.f32 0.2, %v514_v38  ;;  %vm587_vm5 = vcmp.gt.f32.partialorder %v515_v42, 0.0  ;;  %v659_v7 = vmul.f32 0.2, %v515_v42 }
  0x5d   : > { %799 = vst [vmem:[%s1249_s11 + $0xf0] sm:$0xff] %v727_v56  ;;  %v728_v6 = vsel %vm584_vm2, %v512_v34, %v656_v46  ;;  %v729_v44 = vsel %vm585_vm3, %v513_v57, %v657_v51  ;;  %v441_v58 = vmul.f32 %v977_v36, %v1213_v63  ;;  %v442_v59 = vmul.f32 %v980_v40, %v1213_v63  ;;  %v1074_v46 = vld [vmem:[%s1157_s28 + $0xc8] sm:$0xff]  }
  0x5e   : > { %800 = vst [vmem:[%s1249_s11 + $0xf8] sm:$0xff] %v728_v6  ;;  %v730_v60 = vsel %vm586_vm4, %v514_v38, %v658_v62  ;;  %v731_v9 = vsel %vm587_vm5, %v515_v42, %v659_v7  ;;  %v981_v0 = vunpack.c.h.bf16 %v1067_v52  ;;  %v984_v50 = vunpack.c.l.bf16 %v1068_v43 }
  0x5f   : > { %801 = vst [vmem:[%s1249_s11 + $0x100] sm:$0xff] %v729_v44  ;;  %v516_v1 = vadd.f32 %v1228_v14, %v441_v58  ;;  %v517_v10 = vadd.f32 %v1228_v14, %v442_v59  ;;  %v985_v2 = vunpack.c.h.bf16 %v1068_v43  ;;  %v988_v11 = vunpack.c.l.bf16 %v1069_v8 }
  0x60   : > { %802 = vst [vmem:[%s1249_s11 + $0x108] sm:$0xff] %v730_v60  ;;  %v443_v12 = vmul.f32 %v981_v0, %v1213_v63  ;;  %v444_v55 = vmul.f32 %v984_v50, %v1213_v63  ;;  %v989_v3 = vunpack.c.h.bf16 %v1069_v8  ;;  %v992_v13 = vunpack.c.l.bf16 %v1070_v45  ;;  %v1075_v50 = vld [vmem:[%s1157_s28 + $0xd0] sm:$0xff]  }
  0x61   : > { %803 = vst [vmem:[%s1249_s11 + $0x110] sm:$0xff] %v731_v9  ;;  %vm588_vm6 = vcmp.gt.f32.partialorder %v516_v1, 0.0  ;;  %v660_v4 = vmul.f32 0.2, %v516_v1  ;;  %vm589_vm7 = vcmp.gt.f32.partialorder %v517_v10, 0.0  ;;  %v445_v15 = vmul.f32 %v985_v2, %v1213_v63 }
  0x62   : > { %v661_v16 = vmul.f32 0.2, %v517_v10  ;;  %v518_v17 = vadd.f32 %v1228_v14, %v443_v12  ;;  %v519_v18 = vadd.f32 %v1228_v14, %v444_v55  ;;  %v446_v19 = vmul.f32 %v988_v11, %v1213_v63  ;;  %v1076_v55 = vld [vmem:[%s1157_s28 + $0xd8] sm:$0xff]  }
  0x63   : > { %v732_v20 = vsel %vm588_vm6, %v516_v1, %v660_v4  ;;  %v520_v22 = vadd.f32 %v1228_v14, %v445_v15  ;;  %v447_v23 = vmul.f32 %v989_v3, %v1213_v63  ;;  %v448_v24 = vmul.f32 %v992_v13, %v1213_v63 }
  0x64   : > { %804 = vst [vmem:[%s1249_s11 + $0x118] sm:$0xff] %v732_v20  ;;  %v733_v21 = vsel %vm589_vm7, %v517_v10, %v661_v16  ;;  %vm590_vm8 = vcmp.gt.f32.partialorder %v518_v17, 0.0  ;;  %v662_v25 = vmul.f32 0.2, %v518_v17  ;;  %vm591_vm9 = vcmp.gt.f32.partialorder %v519_v18, 0.0  ;;  %v1077_v16 = vld [vmem:[%s1157_s28 + $0xe0] sm:$0xff]  }
  0x65   : > { %805 = vst [vmem:[%s1249_s11 + $0x120] sm:$0xff] %v733_v21  ;;  %v663_v26 = vmul.f32 0.2, %v519_v18  ;;  %vm592_vm10 = vcmp.gt.f32.partialorder %v520_v22, 0.0  ;;  %v664_v27 = vmul.f32 0.2, %v520_v22  ;;  %v521_v28 = vadd.f32 %v1228_v14, %v446_v19 }
  0x66   : > { %v734_v29 = vsel %vm590_vm8, %v518_v17, %v662_v25  ;;  %v522_v47 = vadd.f32 %v1228_v14, %v447_v23  ;;  %v523_v32 = vadd.f32 %v1228_v14, %v448_v24  ;;  %v993_v48 = vunpack.c.h.bf16 %v1070_v45 }
  0x67   : > { %806 = vst [vmem:[%s1249_s11 + $0x128] sm:$0xff] %v734_v29  ;;  %v735_v49 = vsel %vm591_vm9, %v519_v18, %v663_v26  ;;  %v736_v61 = vsel %vm592_vm10, %v520_v22, %v664_v27  ;;  %vm593_vm11 = vcmp.gt.f32.partialorder %v521_v28, 0.0  ;;  %v665_v5 = vmul.f32 0.2, %v521_v28 }
  0x68   : > { %807 = vst [vmem:[%s1249_s11 + $0x130] sm:$0xff] %v735_v49  ;;  %vm594_vm12 = vcmp.gt.f32.partialorder %v522_v47, 0.0  ;;  %v666_v52 = vmul.f32 0.2, %v522_v47  ;;  %vm595_vm13 = vcmp.gt.f32.partialorder %v523_v32, 0.0  ;;  %v449_v53 = vmul.f32 %v993_v48, %v1213_v63 }
  0x69   : > { %808 = vst [vmem:[%s1249_s11 + $0x138] sm:$0xff] %v736_v61  ;;  %v737_v39 = vsel %vm593_vm11, %v521_v28, %v665_v5  ;;  %v667_v54 = vmul.f32 0.2, %v523_v32  ;;  %v996_v34 = vunpack.c.l.bf16 %v1071_v30  ;;  %v997_v35 = vunpack.c.h.bf16 %v1071_v30 }
  0x6a   : > { %809 = vst [vmem:[%s1249_s11 + $0x140] sm:$0xff] %v737_v39  ;;  %v738_v36 = vsel %vm594_vm12, %v522_v47, %v666_v52  ;;  %v524_v37 = vadd.f32 %v1228_v14, %v449_v53  ;;  %v1000_v57 = vunpack.c.l.bf16 %v1072_v33  ;;  %v1001_v38 = vunpack.c.h.bf16 %v1072_v33 }
  0x6b   : > { %810 = vst [vmem:[%s1249_s11 + $0x148] sm:$0xff] %v738_v36  ;;  %v739_v40 = vsel %vm595_vm13, %v523_v32, %v667_v54  ;;  %v450_v41 = vmul.f32 %v996_v34, %v1213_v63  ;;  %v451_v42 = vmul.f32 %v997_v35, %v1213_v63  ;;  %v1004_v43 = vunpack.c.l.bf16 %v1073_v31 }
  0x6c   : > { %811 = vst [vmem:[%s1249_s11 + $0x150] sm:$0xff] %v739_v40  ;;  %vm596_vm14 = vcmp.gt.f32.partialorder %v524_v37, 0.0  ;;  %v668_v51 = vmul.f32 0.2, %v524_v37  ;;  %v452_v56 = vmul.f32 %v1000_v57, %v1213_v63  ;;  %v453_v62 = vmul.f32 %v1001_v38, %v1213_v63  ;;  %v1078_v38 = vld [vmem:[%s1157_s28 + $0xe8] sm:$0xff]  }
  0x6d   : > { %v525_v7 = vadd.f32 %v1228_v14, %v450_v41  ;;  %v526_v8 = vadd.f32 %v1228_v14, %v451_v42  ;;  %v454_v6 = vmul.f32 %v1004_v43, %v1213_v63  ;;  %v1005_v44 = vunpack.c.h.bf16 %v1073_v31  ;;  %v1079_v43 = vld [vmem:[%s1157_s28 + $0xf0] sm:$0xff]  }
  0x6e   : > { %v740_v58 = vsel %vm596_vm14, %v524_v37, %v668_v51  ;;  %v527_v59 = vadd.f32 %v1228_v14, %v452_v56  ;;  %v528_v45 = vadd.f32 %v1228_v14, %v453_v62  ;;  %v1008_v60 = vunpack.c.l.bf16 %v1074_v46  ;;  %v1080_v56 = vld [vmem:[%s1157_s28 + $0xf8] sm:$0xff]  }
  0x6f   : > { %812 = vst [vmem:[%s1249_s11 + $0x158] sm:$0xff] %v740_v58  ;;  %vm597_vm15 = vcmp.gt.f32.partialorder %v525_v7, 0.0  ;;  %v669_v9 = vmul.f32 0.2, %v525_v7  ;;  %vm598_vm0 = vcmp.gt.f32.partialorder %v526_v8, 0.0  ;;  %v529_v0 = vadd.f32 %v1228_v14, %v454_v6 }
  0x70   : > { %v670_v1 = vmul.f32 0.2, %v526_v8  ;;  %vm599_vm1 = vcmp.gt.f32.partialorder %v527_v59, 0.0  ;;  %v671_v10 = vmul.f32 0.2, %v527_v59  ;;  %vm600_vm2 = vcmp.gt.f32.partialorder %v528_v45, 0.0 }
  0x71   : > { %v741_v2 = vsel %vm597_vm15, %v525_v7, %v669_v9  ;;  %v672_v11 = vmul.f32 0.2, %v528_v45  ;;  %vm601_vm3 = vcmp.gt.f32.partialorder %v529_v0, 0.0  ;;  %v673_v12 = vmul.f32 0.2, %v529_v0 }
  0x72   : > { %813 = vst [vmem:[%s1249_s11 + $0x160] sm:$0xff] %v741_v2  ;;  %v742_v3 = vsel %vm598_vm0, %v526_v8, %v670_v1  ;;  %v743_v13 = vsel %vm599_vm1, %v527_v59, %v671_v10  ;;  %v455_v4 = vmul.f32 %v1005_v44, %v1213_v63  ;;  %v456_v15 = vmul.f32 %v1008_v60, %v1213_v63  ;;  %v1081_v1 = vld [vmem:[%s1157_s28 + $0x100] sm:$0xff]  }
  0x73   : > { %814 = vst [vmem:[%s1249_s11 + $0x168] sm:$0xff] %v742_v3  ;;  %v744_v17 = vsel %vm600_vm2, %v528_v45, %v672_v11  ;;  %v745_v18 = vsel %vm601_vm3, %v529_v0, %v673_v12  ;;  %v1009_v19 = vunpack.c.h.bf16 %v1074_v46  ;;  %v1012_v20 = vunpack.c.l.bf16 %v1075_v50 }
  0x74   : > { %815 = vst [vmem:[%s1249_s11 + $0x170] sm:$0xff] %v743_v13  ;;  %v530_v22 = vadd.f32 %v1228_v14, %v455_v4  ;;  %v531_v23 = vadd.f32 %v1228_v14, %v456_v15  ;;  %v1013_v24 = vunpack.c.h.bf16 %v1075_v50  ;;  %v1016_v21 = vunpack.c.l.bf16 %v1076_v55 }
  0x75   : > { %816 = vst [vmem:[%s1249_s11 + $0x178] sm:$0xff] %v744_v17  ;;  %v457_v25 = vmul.f32 %v1009_v19, %v1213_v63  ;;  %v458_v26 = vmul.f32 %v1012_v20, %v1213_v63  ;;  %v1017_v27 = vunpack.c.h.bf16 %v1076_v55  ;;  %v1020_v28 = vunpack.c.l.bf16 %v1077_v16  ;;  %v1082_v20 = vld [vmem:[%s1157_s28 + $0x108] sm:$0xff]  }
  0x76   : > { %817 = vst [vmem:[%s1249_s11 + $0x180] sm:$0xff] %v745_v18  ;;  %vm602_vm4 = vcmp.gt.f32.partialorder %v530_v22, 0.0  ;;  %v674_v29 = vmul.f32 0.2, %v530_v22  ;;  %vm603_vm5 = vcmp.gt.f32.partialorder %v531_v23, 0.0  ;;  %v459_v47 = vmul.f32 %v1013_v24, %v1213_v63 }
  0x77   : > { %v675_v32 = vmul.f32 0.2, %v531_v23  ;;  %v532_v48 = vadd.f32 %v1228_v14, %v457_v25  ;;  %v533_v30 = vadd.f32 %v1228_v14, %v458_v26  ;;  %v460_v49 = vmul.f32 %v1016_v21, %v1213_v63  ;;  %v1083_v26 = vld [vmem:[%s1157_s28 + $0x110] sm:$0xff]  }
  0x78   : > { %v746_v61 = vsel %vm602_vm4, %v530_v22, %v674_v29  ;;  %v534_v5 = vadd.f32 %v1228_v14, %v459_v47  ;;  %v461_v33 = vmul.f32 %v1017_v27, %v1213_v63  ;;  %v462_v52 = vmul.f32 %v1020_v28, %v1213_v63 }
  0x79   : > { %818 = vst [vmem:[%s1249_s11 + $0x188] sm:$0xff] %v746_v61  ;;  %v747_v53 = vsel %vm603_vm5, %v531_v23, %v675_v32  ;;  %vm604_vm6 = vcmp.gt.f32.partialorder %v532_v48, 0.0  ;;  %v676_v31 = vmul.f32 0.2, %v532_v48  ;;  %vm605_vm7 = vcmp.gt.f32.partialorder %v533_v30, 0.0  ;;  %v1084_v32 = vld [vmem:[%s1157_s28 + $0x118] sm:$0xff]  }
  0x7a   : > { %819 = vst [vmem:[%s1249_s11 + $0x190] sm:$0xff] %v747_v53  ;;  %v677_v39 = vmul.f32 0.2, %v533_v30  ;;  %vm606_vm8 = vcmp.gt.f32.partialorder %v534_v5, 0.0  ;;  %v678_v54 = vmul.f32 0.2, %v534_v5  ;;  %v535_v34 = vadd.f32 %v1228_v14, %v460_v49 }
  0x7b   : > { %v748_v35 = vsel %vm604_vm6, %v532_v48, %v676_v31  ;;  %v536_v36 = vadd.f32 %v1228_v14, %v461_v33  ;;  %v537_v37 = vadd.f32 %v1228_v14, %v462_v52  ;;  %v1021_v57 = vunpack.c.h.bf16 %v1077_v16 }
  0x7c   : > { %820 = vst [vmem:[%s1249_s11 + $0x198] sm:$0xff] %v748_v35  ;;  %v749_v40 = vsel %vm605_vm7, %v533_v30, %v677_v39  ;;  %v750_v41 = vsel %vm606_vm8, %v534_v5, %v678_v54  ;;  %vm607_vm9 = vcmp.gt.f32.partialorder %v535_v34, 0.0  ;;  %v679_v42 = vmul.f32 0.2, %v535_v34 }
  0x7d   : > { %821 = vst [vmem:[%s1249_s11 + $0x1a0] sm:$0xff] %v749_v40  ;;  %vm608_vm10 = vcmp.gt.f32.partialorder %v536_v36, 0.0  ;;  %v680_v46 = vmul.f32 0.2, %v536_v36  ;;  %vm609_vm11 = vcmp.gt.f32.partialorder %v537_v37, 0.0  ;;  %v463_v51 = vmul.f32 %v1021_v57, %v1213_v63 }
  0x7e   : > { %822 = vst [vmem:[%s1249_s11 + $0x1a8] sm:$0xff] %v750_v41  ;;  %v751_v62 = vsel %vm607_vm9, %v535_v34, %v679_v42  ;;  %v681_v7 = vmul.f32 0.2, %v537_v37  ;;  %v1024_v8 = vunpack.c.l.bf16 %v1078_v38  ;;  %v1025_v6 = vunpack.c.h.bf16 %v1078_v38 }
  0x7f   : > { %823 = vst [vmem:[%s1249_s11 + $0x1b0] sm:$0xff] %v751_v62  ;;  %v752_v44 = vsel %vm608_vm10, %v536_v36, %v680_v46  ;;  %v538_v58 = vadd.f32 %v1228_v14, %v463_v51  ;;  %v1028_v59 = vunpack.c.l.bf16 %v1079_v43  ;;  %v1029_v45 = vunpack.c.h.bf16 %v1079_v43 }
  0x80   : > { %824 = vst [vmem:[%s1249_s11 + $0x1b8] sm:$0xff] %v752_v44  ;;  %v753_v60 = vsel %vm609_vm11, %v537_v37, %v681_v7  ;;  %v464_v9 = vmul.f32 %v1024_v8, %v1213_v63  ;;  %v465_v0 = vmul.f32 %v1025_v6, %v1213_v63  ;;  %v1032_v50 = vunpack.c.l.bf16 %v1080_v56 }
  0x81   : > { %825 = vst [vmem:[%s1249_s11 + $0x1c0] sm:$0xff] %v753_v60  ;;  %vm610_vm12 = vcmp.gt.f32.partialorder %v538_v58, 0.0  ;;  %v682_v10 = vmul.f32 0.2, %v538_v58  ;;  %v466_v2 = vmul.f32 %v1028_v59, %v1213_v63  ;;  %v467_v11 = vmul.f32 %v1029_v45, %v1213_v63 }
  0x82   : > { %v539_v12 = vadd.f32 %v1228_v14, %v464_v9  ;;  %v540_v55 = vadd.f32 %v1228_v14, %v465_v0  ;;  %v468_v3 = vmul.f32 %v1032_v50, %v1213_v63  ;;  %v1033_v13 = vunpack.c.h.bf16 %v1080_v56 }
  0x83   : > { %v754_v4 = vsel %vm610_vm12, %v538_v58, %v682_v10  ;;  %v541_v15 = vadd.f32 %v1228_v14, %v466_v2  ;;  %v542_v16 = vadd.f32 %v1228_v14, %v467_v11  ;;  %v1036_v17 = vunpack.c.l.bf16 %v1081_v1 }
  0x84   : > { %826 = vst [vmem:[%s1249_s11 + $0x1c8] sm:$0xff] %v754_v4  ;;  %vm611_vm13 = vcmp.gt.f32.partialorder %v539_v12, 0.0  ;;  %v683_v18 = vmul.f32 0.2, %v539_v12  ;;  %vm612_vm14 = vcmp.gt.f32.partialorder %v540_v55, 0.0  ;;  %v543_v19 = vadd.f32 %v1228_v14, %v468_v3 }
  0x85   : > { %v684_v22 = vmul.f32 0.2, %v540_v55  ;;  %vm613_vm15 = vcmp.gt.f32.partialorder %v541_v15, 0.0  ;;  %v685_v23 = vmul.f32 0.2, %v541_v15  ;;  %vm614_vm0 = vcmp.gt.f32.partialorder %v542_v16, 0.0 }
  0x86   : > { %v755_v24 = vsel %vm611_vm13, %v539_v12, %v683_v18  ;;  %v686_v21 = vmul.f32 0.2, %v542_v16  ;;  %vm615_vm1 = vcmp.gt.f32.partialorder %v543_v19, 0.0  ;;  %v687_v25 = vmul.f32 0.2, %v543_v19 }
  0x87   : > { %827 = vst [vmem:[%s1249_s11 + $0x1d0] sm:$0xff] %v755_v24  ;;  %v756_v27 = vsel %vm612_vm14, %v540_v55, %v684_v22  ;;  %v757_v28 = vsel %vm613_vm15, %v541_v15, %v685_v23  ;;  %v469_v29 = vmul.f32 %v1033_v13, %v1213_v63  ;;  %v470_v47 = vmul.f32 %v1036_v17, %v1213_v63 }
  0x88   : > { %828 = vst [vmem:[%s1249_s11 + $0x1d8] sm:$0xff] %v756_v27  ;;  %v758_v48 = vsel %vm614_vm0, %v542_v16, %v686_v21  ;;  %v759_v30 = vsel %vm615_vm1, %v543_v19, %v687_v25  ;;  %v1037_v49 = vunpack.c.h.bf16 %v1081_v1  ;;  %v1040_v61 = vunpack.c.l.bf16 %v1082_v20 }
  0x89   : > { %829 = vst [vmem:[%s1249_s11 + $0x1e0] sm:$0xff] %v757_v28  ;;  %v544_v5 = vadd.f32 %v1228_v14, %v469_v29  ;;  %v545_v33 = vadd.f32 %v1228_v14, %v470_v47  ;;  %v1041_v52 = vunpack.c.h.bf16 %v1082_v20  ;;  %v1044_v53 = vunpack.c.l.bf16 %v1083_v26 }
  0x8a   : > { %830 = vst [vmem:[%s1249_s11 + $0x1e8] sm:$0xff] %v758_v48  ;;  %v471_v31 = vmul.f32 %v1037_v49, %v1213_v63  ;;  %v472_v39 = vmul.f32 %v1040_v61, %v1213_v63  ;;  %v1045_v54 = vunpack.c.h.bf16 %v1083_v26  ;;  %v1048_v34 = vunpack.c.l.bf16 %v1084_v32 }
  0x8b   : > { %831 = vst [vmem:[%s1249_s11 + $0x1f0] sm:$0xff] %v759_v30  ;;  %vm616_vm2 = vcmp.gt.f32.partialorder %v544_v5, 0.0  ;;  %v688_v35 = vmul.f32 0.2, %v544_v5  ;;  %vm617_vm3 = vcmp.gt.f32.partialorder %v545_v33, 0.0  ;;  %v473_v36 = vmul.f32 %v1041_v52, %v1213_v63 }
  0x8c   : > { %v689_v37 = vmul.f32 0.2, %v545_v33  ;;  %v546_v57 = vadd.f32 %v1228_v14, %v471_v31  ;;  %v547_v38 = vadd.f32 %v1228_v14, %v472_v39  ;;  %v474_v40 = vmul.f32 %v1044_v53, %v1213_v63 }
  0x8d   : > { %v760_v41 = vsel %vm616_vm2, %v544_v5, %v688_v35  ;;  %v548_v42 = vadd.f32 %v1228_v14, %v473_v36  ;;  %v475_v43 = vmul.f32 %v1045_v54, %v1213_v63  ;;  %v476_v46 = vmul.f32 %v1048_v34, %v1213_v63 }
  0x8e   : > { %832 = vst [vmem:[%s1249_s11 + $0x1f8] sm:$0xff] %v760_v41  ;;  %v761_v51 = vsel %vm617_vm3, %v545_v33, %v689_v37  ;;  %vm618_vm4 = vcmp.gt.f32.partialorder %v546_v57, 0.0  ;;  %v690_v56 = vmul.f32 0.2, %v546_v57  ;;  %vm619_vm5 = vcmp.gt.f32.partialorder %v547_v38, 0.0 }
  0x8f   : > { %833 = vst [vmem:[%s1249_s11 + $0x200] sm:$0xff] %v761_v51  ;;  %v691_v62 = vmul.f32 0.2, %v547_v38  ;;  %vm620_vm6 = vcmp.gt.f32.partialorder %v548_v42, 0.0  ;;  %v692_v7 = vmul.f32 0.2, %v548_v42  ;;  %v549_v8 = vadd.f32 %v1228_v14, %v474_v40 }
  0x90   : > { %v762_v6 = vsel %vm618_vm4, %v546_v57, %v690_v56  ;;  %v550_v44 = vadd.f32 %v1228_v14, %v475_v43  ;;  %v551_v58 = vadd.f32 %v1228_v14, %v476_v46  ;;  %v1049_v59 = vunpack.c.h.bf16 %v1084_v32 }
  0x91   : > { %834 = vst [vmem:[%s1249_s11 + $0x208] sm:$0xff] %v762_v6  ;;  %v763_v45 = vsel %vm619_vm5, %v547_v38, %v691_v62  ;;  %v764_v60 = vsel %vm620_vm6, %v548_v42, %v692_v7  ;;  %vm621_vm7 = vcmp.gt.f32.partialorder %v549_v8, 0.0  ;;  %v693_v9 = vmul.f32 0.2, %v549_v8 }
  0x92   : > { %835 = vst [vmem:[%s1249_s11 + $0x210] sm:$0xff] %v763_v45  ;;  %vm622_vm8 = vcmp.gt.f32.partialorder %v550_v44, 0.0  ;;  %v694_v0 = vmul.f32 0.2, %v550_v44  ;;  %vm623_vm9 = vcmp.gt.f32.partialorder %v551_v58, 0.0  ;;  %v477_v50 = vmul.f32 %v1049_v59, %v1213_v63 }
  0x93   : > { %836 = vst [vmem:[%s1249_s11 + $0x218] sm:$0xff] %v764_v60  ;;  %v765_v1 = vsel %vm621_vm7, %v549_v8, %v693_v9  ;;  %v695_v10 = vmul.f32 0.2, %v551_v58 }
  0x94   : > { %837 = vst [vmem:[%s1249_s11 + $0x220] sm:$0xff] %v765_v1  ;;  %v766_v2 = vsel %vm622_vm8, %v550_v44, %v694_v0  ;;  %v552_v11 = vadd.f32 %v1228_v14, %v477_v50 }
  0x95   : > { %838 = vst [vmem:[%s1249_s11 + $0x228] sm:$0xff] %v766_v2  ;;  %v767_v12 = vsel %vm623_vm9, %v551_v58, %v695_v10 }
  0x96   : > { %839 = vst [vmem:[%s1249_s11 + $0x230] sm:$0xff] %v767_v12  ;;  %vm624_vm10 = vcmp.gt.f32.partialorder %v552_v11, 0.0  ;;  %v696_v55 = vmul.f32 0.2, %v552_v11 }
  0x98   : > { %v768_v3 = vsel %vm624_vm10, %v552_v11, %v696_v55 }
  0x99   : > { %840 = vst [vmem:[%s1249_s11 + $0x238] sm:$0xff] %v768_v3 }
  0x9a PF: > { %s15_s18 = sadd.s32 1, %s1101_s18  }
  0x9b   : > { %p12_p4 = scmp.ge.s32.totalorder %s15_s18, 4  }
  0x9d   :  { %14 = sbr.rel (!%p12_p4) target bundleno = 1 (0x1), region = 70 }

// kernel: conv_block_forward.2
= control target key start
LH: loop header
LB: loop body
LE: loop exit
PB: predicated region body
PF: predicated region fallthrough
CT: control target
= control target key end

     0   :  { %s1514_s15 = smov 0   ;;  %s1516_s16 = smov 0   ;;  %s1781_s0 = inlined_call_operand.vmem [shape: bf16[1152,64], index: 0, kind: input, shape index: {}]   ;;  %s1782_s1 = inlined_call_operand.vmem [shape: bf16[64,128], index: 1, kind: input, shape index: {}]   ;;  %s1783_s2 = inlined_call_operand.vmem [shape: bf16[1152,128], index: 2, kind: output, shape index: {0}]   ;;  %s1784_s3 = inlined_call_operand.vmem [shape: f32[1,256], index: 3, kind: output, shape index: {1}]   ;;  %s1785_s4 = inlined_call_operand.vmem [shape: f32[1,256], index: 4, kind: output, shape index: {2}]  }
   0x1   :  { %s1518_s17 = smov 0   ;;  %s1520_s18 = smov 0  }
   0x2   :  { %s1522_s19 = smov 0  }
   0x3 LB: > { %s30_s20 = sadd.s32 1, %s1478_s17  ;;  %s34_s21 = sadd.s32 1, %s1482_s18  ;;  %s1486_s19 = sphi %s1522_s19, %s15_s19   ;;  %s1482_s18 = sphi %s1520_s18, %s1789_s18   ;;  %s1478_s17 = sphi %s1518_s17, %s1788_s17   ;;  %s1474_s16 = sphi %s1516_s16, %s1787_s16   ;;  %s1470_s15 = sphi %s1514_s15, %s1786_s15  }
   0x4   : > { %p32_p0 = scmp.ge.s32.totalorder %s30_s20, 2  ;;  %p1151_p1 = scmp.ge.s32.totalorder %s1486_s19, 1 }
   0x5   : > { %p215_p2 = scmp.lt.s32.totalorder %s1486_s19, 5 }
   0x6   : > { %s1791_s20 = smov (%p32_p0, %s30_s20), 0  ;;  %s1793_s21 = smov (!%p32_p0, %s34_s21), %s1482_s18 }
   0x7   : > { %p216_p3 = pnand %p1151_p1, %p215_p2  ;;  %p36_p4 = scmp.ge.s32.totalorder %s1793_s21, 2 }
   0x8   : > { %s1152_s22 = sshll.u32 (!%p216_p3), %s1474_s16, 1  ;;  %p288_p5 = scmp.lt.s32.totalorder (!%p216_p3), %s1474_s16, 1 }
   0x9   : > { %s1795_s21 = smov (%p36_p4, %s1793_s21), 0  ;;  %219 = sbr.rel (%p216_p3) target bundleno = 292 (0x124), region = 28 }
   0xa   : > { %s260_s23 = sadd.s32 (!%p216_p3), %s1470_s15, %s1152_s22  ;;  %p295_p6 = scmp.eq.s32.totalorder (!%p216_p3), %s1470_s15, 0 }
   0xb   : > { %s261_s24 = smul.u32 (!%p216_p3), 36, %s260_s23 }
   0xd   : > { %p262_p7 = scmp.lt.s32.totalorder (!%p216_p3), %s261_s24, 143 }
   0xe   : > { %s1797_s16 = smov (!%p288_p5, %s1474_s16), 1  ;;  %300 = sbr.rel (!%p295_p6) target bundleno = 19 (0x13), region = 32  ;;  %v1488_v0 = vmov (%p295_p6), 0.0  }
   0xf   : > { %s1551_s27 = scalar_lea.vmem %s1784_s3, %s1797_s16  ;;  %s1556_s30 = scalar_lea.vmem %s1785_s4, %s1797_s16 }
  0x10   : > { %s1799_s24 = smov (!%p262_p7, %s261_s24), 143  ;;  %301 = vst [vmem:[%s1551_s27] sm:$0x1] (%p295_p6), %v1488_v0 }
  0x11   : > { %s1153_s5 = sshll.u32 %s1799_s24, 2  ;;  %302 = vst [vmem:[%s1556_s30] sm:$0x1] (%p295_p6), %v1488_v0 }
  0x12   : > { %s1561_s8 = scalar_lea.vmem %s1781_s0, %s1153_s5  ;;  %s1566_s11 = scalar_lea.vmem %s1783_s2, %s1153_s5 }
  0x13 PF: > { %v1287_v1 = vld [vmem:[%s1782_s1 + $0x18] sm:$0xff]  ;;  %v1286_v2 = vld [vmem:[%s1782_s1 + $0x10] sm:$0xff]  ;;  %v1285_v3 = vld [vmem:[%s1782_s1 + $0x8] sm:$0xff]  ;;  %vm536_vm0 = vcmask 523264  }
  0x14   : > { %595 = vmatpush.bf16.msra.mxu0 %v1287_v1  ;;  %1395 = vmatpush.bf16.msra.mxu1 %v1287_v1  ;;  %v1284_v4 = vld [vmem:[%s1782_s1] sm:$0xff]  ;;  %v1275_v7 = vld [vmem:[%s1561_s8 + $0x48] sm:$0xff]  ;;  %v1280_v8 = vld [vmem:[%s1561_s8 + $0x70] sm:$0xff] }
  0x15   : > { %1396 = vmatpush.bf16.msra.mxu2 %v1287_v1  ;;  %1397 = vmatpush.bf16.msra.mxu3 %v1287_v1  ;;  %v1266_v5 = vld [vmem:[%s1561_s8] sm:$0xff]  ;;  %v1267_v9 = vld [vmem:[%s1561_s8 + $0x8] sm:$0xff]  ;;  %v1276_v11 = vld [vmem:[%s1561_s8 + $0x50] sm:$0xff] }
  0x16   : > { %v1270_v6 = vld [vmem:[%s1561_s8 + $0x20] sm:$0xff]  ;;  %v1271_v10 = vld [vmem:[%s1561_s8 + $0x28] sm:$0xff]  ;;  %v1281_v12 = vld [vmem:[%s1561_s8 + $0x78] sm:$0xff] }
  0x17   : > { %v1268_v13 = vld [vmem:[%s1561_s8 + $0x10] sm:$0xff]  ;;  %v1277_v15 = vld [vmem:[%s1561_s8 + $0x58] sm:$0xff]  ;;  %v1282_v16 = vld [vmem:[%s1561_s8 + $0x80] sm:$0xff] }
  0x18   : > { %596 = vmatpush.bf16.msra.mxu0 %v1286_v2  ;;  %1398 = vmatpush.bf16.msra.mxu1 %v1286_v2  ;;  %v1272_v14 = vld [vmem:[%s1561_s8 + $0x30] sm:$0xff]  ;;  %v1269_v17 = vld [vmem:[%s1561_s8 + $0x18] sm:$0xff]  ;;  %v1278_v19 = vld [vmem:[%s1561_s8 + $0x60] sm:$0xff] }
  0x19   : > { %1399 = vmatpush.bf16.msra.mxu2 %v1286_v2  ;;  %1400 = vmatpush.bf16.msra.mxu3 %v1286_v2  ;;  %v1273_v18 = vld [vmem:[%s1561_s8 + $0x38] sm:$0xff]  ;;  %v1283_v20 = vld [vmem:[%s1561_s8 + $0x88] sm:$0xff]  ;;  %v1274_v21 = vld [vmem:[%s1561_s8 + $0x40] sm:$0xff] }
  0x1a   : > { %v1279_v22 = vld [vmem:[%s1561_s8 + $0x68] sm:$0xff] }
  0x1c   : > { %597 = vmatpush.bf16.msra.mxu0 %v1285_v3  ;;  %1401 = vmatpush.bf16.msra.mxu1 %v1285_v3 }
  0x1d   : > { %1402 = vmatpush.bf16.msra.mxu2 %v1285_v3  ;;  %1403 = vmatpush.bf16.msra.mxu3 %v1285_v3 }
  0x20   : > { %598 = vmatpush.bf16.msra.mxu0 %v1284_v4  ;;  %1404 = vmatpush.bf16.msra.mxu1 %v1284_v4 }
  0x21   : > { %1405 = vmatpush.bf16.msra.mxu2 %v1284_v4  ;;  %1406 = vmatpush.bf16.msra.mxu3 %v1284_v4 }
  0x23   : > { %1245 = vmatmul.msk.bf16.vlgmr.msra.gmra.mxu0 %vm536_vm0, %v1266_v5  ;;  %1249 = vmatmul.msk.bf16.vlgmr.msra.gmra.mxu1 %vm536_vm0, %v1270_v6 }
  0x24   : > { %1254 = vmatmul.msk.bf16.vlgmr.msra.gmra.mxu2 %vm536_vm0, %v1275_v7  ;;  %1259 = vmatmul.msk.bf16.vlgmr.msra.gmra.mxu3 %vm536_vm0, %v1280_v8 }
  0x33   : > { %1246 = vmatmul.msk.bf16.gmra.mxu0 %vm536_vm0, %v1267_v9  ;;  %1250 = vmatmul.msk.bf16.gmra.mxu1 %vm536_vm0, %v1271_v10 }
  0x34   : > { %1255 = vmatmul.msk.bf16.gmra.mxu2 %vm536_vm0, %v1276_v11  ;;  %1260 = vmatmul.msk.bf16.gmra.mxu3 %vm536_vm0, %v1281_v12 }
  0x43   : > { %1247 = vmatmul.msk.bf16.gmra.mxu0 %vm536_vm0, %v1268_v13  ;;  %1251 = vmatmul.msk.bf16.gmra.mxu1 %vm536_vm0, %v1272_v14 }
  0x44   : > { %1256 = vmatmul.msk.bf16.gmra.mxu2 %vm536_vm0, %v1277_v15  ;;  %1261 = vmatmul.msk.bf16.gmra.mxu3 %vm536_vm0, %v1282_v16 }
  0x53   : > { %1248 = vmatmul.msk.bf16.gmra.mxu0 %vm536_vm0, %v1269_v17  ;;  %1252 = vmatmul.msk.bf16.gmra.mxu1 %vm536_vm0, %v1273_v18 }
  0x54   : > { %1257 = vmatmul.msk.bf16.gmra.mxu2 %vm536_vm0, %v1278_v19  ;;  %1262 = vmatmul.msk.bf16.gmra.mxu3 %vm536_vm0, %v1283_v20 }
  0x63   : > { %1253 = vmatmul.msk.bf16.gmra.mxu1 %vm536_vm0, %v1274_v21 }
  0x64   : > { %1258 = vmatmul.msk.bf16.gmra.mxu2 %vm536_vm0, %v1279_v22 }
  0xa0   : > { %v600_v23 = vpop.f32.mrf.mxu0  ;;  %v1618_v24 = vpop.f32.mrf.mxu1 }
  0xa1   : > { %v918_v55 = vmul.f32 %v600_v23, %v600_v23 }
  0xa7   : > { %v1620_v25 = vpop.f32.mrf.mxu2  ;;  %v1634_v34 = vpop.f32.mrf.mxu3 }
  0xa8   : > { %v602_v26 = vpop.f32.mrf.mxu0  ;;  %v1622_v27 = vpop.f32.mrf.mxu1 }
  0xa9   : > { %v1291_v28 = vpack.c.bf16 %v602_v26, %v600_v23  ;;  %v1311_v29 = vpack.c.bf16 %v1622_v27, %v1618_v24  ;;  %v919_v53 = vmul.f32 %v602_v26, %v602_v26  ;;  %v874_v57 = vadd.f32 %v602_v26, %v600_v23 }
  0xaa   : > { %v926_v23 = vmul.f32 %v1618_v24, %v1618_v24 }
  0xab   : > { %1292 = vst [vmem:[%s1566_s11] sm:$0xff] %v1291_v28   ;;  %v954_v58 = vadd.f32 %v919_v53, %v918_v55 }
  0xac   : > { %1381 = vst [vmem:[%s1566_s11 + $0x20] sm:$0xff] %v1311_v29   ;;  %v927_v29 = vmul.f32 %v1622_v27, %v1622_v27 }
  0xaf   : > { %v1628_v30 = vpop.f32.mrf.mxu2  ;;  %v1643_v40 = vpop.f32.mrf.mxu3 }
  0xb0   : > { %v605_v31 = vpop.f32.mrf.mxu0  ;;  %v1630_v32 = vpop.f32.mrf.mxu1  ;;  %v1336_v33 = vpack.c.bf16 %v1628_v30, %v1620_v25  ;;  %v1361_v41 = vpack.c.bf16 %v1643_v40, %v1634_v34 }
  0xb1   : > { %v920_v56 = vmul.f32 %v605_v31, %v605_v31  ;;  %v875_v60 = vadd.f32 %v874_v57, %v605_v31 }
  0xb2   : > { %1386 = vst [vmem:[%s1566_s11 + $0x48] sm:$0xff] %v1336_v33  }
  0xb3   : > { %1391 = vst [vmem:[%s1566_s11 + $0x70] sm:$0xff] %v1361_v41   ;;  %v955_v62 = vadd.f32 %v954_v58, %v920_v56 }
  0xb7   : > { %v1637_v35 = vpop.f32.mrf.mxu2  ;;  %v1656_v46 = vpop.f32.mrf.mxu3 }
  0xb8   : > { %v607_v36 = vpop.f32.mrf.mxu0  ;;  %v1639_v37 = vpop.f32.mrf.mxu1 }
  0xb9   : > { %v1296_v38 = vpack.c.bf16 %v607_v36, %v605_v31  ;;  %v1316_v39 = vpack.c.bf16 %v1639_v37, %v1630_v32  ;;  %v921_v59 = vmul.f32 %v607_v36, %v607_v36  ;;  %v876_v3 = vadd.f32 %v875_v60, %v607_v36 }
  0xba   : > { %v928_v36 = vmul.f32 %v1630_v32, %v1630_v32 }
  0xbb   : > { %1378 = vst [vmem:[%s1566_s11 + $0x8] sm:$0xff] %v1296_v38   ;;  %v956_v5 = vadd.f32 %v955_v62, %v921_v59 }
  0xbc   : > { %1382 = vst [vmem:[%s1566_s11 + $0x28] sm:$0xff] %v1316_v39  }
  0xbf   : > { %v1650_v42 = vpop.f32.mrf.mxu2  ;;  %v1665_v52 = vpop.f32.mrf.mxu3 }
  0xc0   : > { %v610_v43 = vpop.f32.mrf.mxu0  ;;  %v1652_v44 = vpop.f32.mrf.mxu1  ;;  %v1341_v45 = vpack.c.bf16 %v1650_v42, %v1637_v35  ;;  %v1366_v54 = vpack.c.bf16 %v1665_v52, %v1656_v46 }
  0xc1   : > { %v922_v63 = vmul.f32 %v610_v43, %v610_v43  ;;  %v877_v7 = vadd.f32 %v876_v3, %v610_v43 }
  0xc2   : > { %1387 = vst [vmem:[%s1566_s11 + $0x50] sm:$0xff] %v1341_v45   ;;  %v929_v45 = vmul.f32 %v1639_v37, %v1639_v37 }
  0xc3   : > { %1392 = vst [vmem:[%s1566_s11 + $0x78] sm:$0xff] %v1366_v54   ;;  %v957_v8 = vadd.f32 %v956_v5, %v922_v63 }
  0xc7   : > { %v1659_v47 = vpop.f32.mrf.mxu2  ;;  %v1676_v4 = vpop.f32.mrf.mxu3 }
  0xc8   : > { %v612_v48 = vpop.f32.mrf.mxu0  ;;  %v1661_v49 = vpop.f32.mrf.mxu1 }
  0xc9   : > { %v1301_v50 = vpack.c.bf16 %v612_v48, %v610_v43  ;;  %v1321_v51 = vpack.c.bf16 %v1661_v49, %v1652_v44  ;;  %v923_v6 = vmul.f32 %v612_v48, %v612_v48  ;;  %v878_v10 = vadd.f32 %v877_v7, %v612_v48 }
  0xca   : > { %v931_v54 = vmul.f32 %v1661_v49, %v1661_v49 }
  0xcb   : > { %1379 = vst [vmem:[%s1566_s11 + $0x10] sm:$0xff] %v1301_v50   ;;  %v958_v11 = vadd.f32 %v957_v8, %v923_v6 }
  0xcc   : > { %1383 = vst [vmem:[%s1566_s11 + $0x30] sm:$0xff] %v1321_v51  }
  0xcf   : > { %v1672_v61 = vpop.f32.mrf.mxu2  ;;  %v1681_v21 = vpop.f32.mrf.mxu3 }
  0xd0   : > { %v615_v0 = vpop.f32.mrf.mxu0  ;;  %v635_v1 = vpop.f32.mrf.mxu1  ;;  %v1346_v2 = vpack.c.bf16 %v1672_v61, %v1659_v47  ;;  %v1371_v22 = vpack.c.bf16 %v1681_v21, %v1676_v4 }
  0xd1   : > { %v924_v9 = vmul.f32 %v615_v0, %v615_v0  ;;  %v879_v12 = vadd.f32 %v878_v10, %v615_v0  ;;  %v932_v57 = vmul.f32 %v635_v1, %v635_v1 }
  0xd2   : > { %1388 = vst [vmem:[%s1566_s11 + $0x58] sm:$0xff] %v1346_v2  }
  0xd3   : > { %v959_v14 = vadd.f32 %v958_v11, %v924_v9  ;;  %1393 = vst [vmem:[%s1566_s11 + $0x80] sm:$0xff] %v1371_v22   ;;  %v936_v9 = vmul.f32 %v1620_v25, %v1620_v25  ;;  %v939_v22 = vmul.f32 %v1650_v42, %v1650_v42 }
  0xd7   : > { %v1679_v13 = vpop.f32.mrf.mxu2  ;;  %v1701_v51 = vpop.f32.mrf.mxu3 }
  0xd8   : > { %v617_v15 = vpop.f32.mrf.mxu0  ;;  %v637_v16 = vpop.f32.mrf.mxu1 }
  0xd9   : > { %v1306_v17 = vpack.c.bf16 %v617_v15, %v615_v0  ;;  %v880_v18 = vadd.f32 %v879_v12, %v617_v15  ;;  %v925_v19 = vmul.f32 %v617_v15, %v617_v15  ;;  %v1326_v20 = vpack.c.bf16 %v637_v16, %v635_v1 }
  0xda   : > { %v933_v63 = vmul.f32 %v637_v16, %v637_v16  ;;  %v937_v15 = vmul.f32 %v1628_v30, %v1628_v30 }
  0xdb   : > { %1380 = vst [vmem:[%s1566_s11 + $0x18] sm:$0xff] %v1306_v17   ;;  %v881_v26 = vadd.f32 %v880_v18, %v1618_v24  ;;  %v960_v28 = vadd.f32 %v959_v14, %v925_v19  ;;  %v938_v18 = vmul.f32 %v1637_v35, %v1637_v35 }
  0xdc   : > { %1384 = vst [vmem:[%s1566_s11 + $0x38] sm:$0xff] %v1326_v20  }
  0xdd   : > { %v882_v31 = vadd.f32 %v881_v26, %v1622_v27  ;;  %v961_v33 = vadd.f32 %v960_v28, %v926_v23  ;;  %v930_v27 = vmul.f32 %v1652_v44, %v1652_v44  ;;  %v940_v26 = vmul.f32 %v1659_v47, %v1659_v47 }
  0xdf   : > { %v883_v38 = vadd.f32 %v882_v31, %v1630_v32  ;;  %v962_v39 = vadd.f32 %v961_v33, %v927_v29  ;;  %v662_v41 = vpop.f32.mrf.mxu2  ;;  %v1710_v3 = vpop.f32.mrf.mxu3  ;;  %v941_v29 = vmul.f32 %v1672_v61, %v1672_v61 }
  0xe0   : > { %v640_v43 = vpop.f32.mrf.mxu1  ;;  %v1351_v24 = vpack.c.bf16 %v662_v41, %v1679_v13 }
  0xe1   : > { %v884_v48 = vadd.f32 %v883_v38, %v1639_v37  ;;  %v963_v50 = vadd.f32 %v962_v39, %v928_v36  ;;  %v934_v6 = vmul.f32 %v640_v43, %v640_v43  ;;  %v943_v39 = vmul.f32 %v662_v41, %v662_v41 }
  0xe2   : > { %1389 = vst [vmem:[%s1566_s11 + $0x60] sm:$0xff] %v1351_v24  }
  0xe3   : > { %v964_v53 = vadd.f32 %v963_v50, %v929_v45  ;;  %v885_v32 = vadd.f32 %v884_v48, %v1652_v44  ;;  %v1376_v44 = vpack.c.bf16 %v1710_v3, %v1701_v51 }
  0xe5   : > { %v886_v55 = vadd.f32 %v885_v32, %v1661_v49  ;;  %v965_v56 = vadd.f32 %v964_v53, %v930_v27  ;;  %1394 = vst [vmem:[%s1566_s11 + $0x88] sm:$0xff] %v1376_v44   ;;  %v946_v53 = vmul.f32 %v1634_v34, %v1634_v34  ;;  %v952_v44 = vmul.f32 %v1701_v51, %v1701_v51 }
  0xe7   : > { %v887_v37 = vadd.f32 %v886_v55, %v635_v1  ;;  %v966_v58 = vadd.f32 %v965_v56, %v931_v54  ;;  %v665_v59 = vpop.f32.mrf.mxu2  ;;  %v947_v54 = vmul.f32 %v1643_v40, %v1643_v40 }
  0xe8   : > { %v642_v60 = vpop.f32.mrf.mxu1  ;;  %v944_v48 = vmul.f32 %v665_v59, %v665_v59 }
  0xe9   : > { %v888_v62 = vadd.f32 %v887_v37, %v637_v16  ;;  %v967_v0 = vadd.f32 %v966_v58, %v932_v57  ;;  %v1331_v2 = vpack.c.bf16 %v642_v60, %v640_v43  ;;  %v935_v8 = vmul.f32 %v642_v60, %v642_v60 }
  0xea   : > { %v949_v37 = vmul.f32 %v1665_v52, %v1665_v52 }
  0xeb   : > { %v968_v5 = vadd.f32 %v967_v0, %v933_v63  ;;  %v889_v49 = vadd.f32 %v888_v62, %v640_v43  ;;  %1385 = vst [vmem:[%s1566_s11 + $0x40] sm:$0xff] %v1331_v2   ;;  %v951_v63 = vmul.f32 %v1681_v21, %v1681_v21 }
  0xed   : > { %v969_v7 = vadd.f32 %v968_v5, %v934_v6  ;;  %v890_v1 = vadd.f32 %v889_v49, %v642_v60 }
  0xef   : > { %v891_v10 = vadd.f32 %v890_v1, %v1620_v25  ;;  %v970_v11 = vadd.f32 %v969_v7, %v935_v8  ;;  %v667_v12 = vpop.f32.mrf.mxu2 }
  0xf0   : > { %v1356_v14 = vpack.c.bf16 %v667_v12, %v665_v59  ;;  %v945_v27 = vmul.f32 %v667_v12, %v667_v12 }
  0xf1   : > { %v892_v16 = vadd.f32 %v891_v10, %v1628_v30  ;;  %v971_v17 = vadd.f32 %v970_v11, %v936_v9 }
  0xf2   : > { %1390 = vst [vmem:[%s1566_s11 + $0x68] sm:$0xff] %v1356_v14  }
  0xf3   : > { %v893_v19 = vadd.f32 %v892_v16, %v1637_v35  ;;  %v972_v20 = vadd.f32 %v971_v17, %v937_v15  ;;  %v942_v35 = vmul.f32 %v1679_v13, %v1679_v13  ;;  %v917_v16 = vld [vmem:[%s1556_s30] sm:$0x1] }
  0xf5   : > { %v894_v25 = vadd.f32 %v893_v19, %v1650_v42  ;;  %v973_v23 = vadd.f32 %v972_v20, %v938_v18 }
  0xf7   : > { %v974_v28 = vadd.f32 %v973_v23, %v939_v22  ;;  %v895_v30 = vadd.f32 %v894_v25, %v1659_v47 }
  0xf9   : > { %v896_v31 = vadd.f32 %v895_v30, %v1672_v61  ;;  %v975_v33 = vadd.f32 %v974_v28, %v940_v26 }
  0xfb   : > { %v897_v36 = vadd.f32 %v896_v31, %v1679_v13  ;;  %v976_v38 = vadd.f32 %v975_v33, %v941_v29 }
  0xfd   : > { %v898_v42 = vadd.f32 %v897_v36, %v662_v41  ;;  %v977_v43 = vadd.f32 %v976_v38, %v942_v35  ;;  %v948_v41 = vmul.f32 %v1656_v46, %v1656_v46 }
  0xff   : > { %v978_v24 = vadd.f32 %v977_v43, %v943_v39  ;;  %v899_v45 = vadd.f32 %v898_v42, %v665_v59 }
 0x101   : > { %v979_v50 = vadd.f32 %v978_v24, %v944_v48  ;;  %v900_v47 = vadd.f32 %v899_v45, %v667_v12 }
 0x103   : > { %v901_v61 = vadd.f32 %v900_v47, %v1634_v34  ;;  %v980_v32 = vadd.f32 %v979_v50, %v945_v27  ;;  %v950_v34 = vmul.f32 %v1676_v4, %v1676_v4 }
 0x105   : > { %v902_v13 = vadd.f32 %v901_v61, %v1643_v40  ;;  %v981_v55 = vadd.f32 %v980_v32, %v946_v53 }
 0x107   : > { %v903_v56 = vadd.f32 %v902_v13, %v1656_v46  ;;  %v982_v57 = vadd.f32 %v981_v55, %v947_v54 }
 0x109   : > { %v983_v58 = vadd.f32 %v982_v57, %v948_v41  ;;  %v904_v59 = vadd.f32 %v903_v56, %v1665_v52 }
 0x10b   : > { %v905_v60 = vadd.f32 %v904_v59, %v1676_v4  ;;  %v984_v62 = vadd.f32 %v983_v58, %v949_v37  ;;  %v953_v4 = vmul.f32 %v1710_v3, %v1710_v3 }
 0x10d   : > { %v906_v40 = vadd.f32 %v905_v60, %v1681_v21  ;;  %v985_v0 = vadd.f32 %v984_v62, %v950_v34 }
 0x10f   : > { %v986_v46 = vadd.f32 %v985_v0, %v951_v63  ;;  %v907_v2 = vadd.f32 %v906_v40, %v1701_v51  ;;  %v873_v51 = vld [vmem:[%s1551_s27] sm:$0x1] }
 0x111   : > { %v987_v52 = vadd.f32 %v986_v46, %v952_v44  ;;  %v908_v5 = vadd.f32 %v907_v2, %v1710_v3 }
 0x113   : > { %v909_v49 = vrot.slane %v908_v5, 4  ;;  %v988_v6 = vadd.f32 %v987_v52, %v953_v4 }
 0x115   : > { %v910_v7 = vadd.f32 %v909_v49, %v908_v5  ;;  %v989_v21 = vrot.slane %v988_v6, 4 }
 0x117   : > { %v911_v1 = vrot.slane %v910_v7, 2  ;;  %v990_v8 = vadd.f32 %v989_v21, %v988_v6 }
 0x119   : > { %v912_v9 = vadd.f32 %v911_v1, %v910_v7  ;;  %v991_v10 = vrot.slane %v990_v8, 2 }
 0x11b   : > { %v913_v11 = vrot.slane %v912_v9, 1  ;;  %v992_v12 = vadd.f32 %v991_v10, %v990_v8 }
 0x11d   : > { %v914_v14 = vadd.f32 %v913_v11, %v912_v9  ;;  %v993_v15 = vrot.slane %v992_v12, 1 }
 0x11f   : > { %v915_v17 = vadd.f32 %v914_v14, %v873_v51  ;;  %v994_v18 = vadd.f32 %v993_v15, %v992_v12 }
 0x121   : > { %916 = vst [vmem:[%s1551_s27] sm:$0x1] %v915_v17  ;;  %v995_v3 = vadd.f32 %v994_v18, %v917_v16 }
 0x123   : > { %996 = vst [vmem:[%s1556_s30] sm:$0x1] %v995_v3 }
 0x124 PF: > { %s15_s19 = sadd.s32 1, %s1486_s19   ;;  %s1786_s15 = smov %s1478_s17 }
 0x125   : > { %p12_p8 = scmp.ge.s32.totalorder %s15_s19, 6   ;;  %s1787_s16 = smov %s1482_s18 }
 0x126   : > { %s1788_s17 = smov %s1791_s20  ;;  %s1789_s18 = smov %s1795_s21 }
 0x127   :  { %14 = sbr.rel (!%p12_p8) target bundleno = 3 (0x3), region = 97 }

</bundles_post_ra>
